<compile_context>
chip_gen: v5e
topology: v5e:2x2
jax: 0.10.0
libtpu: 0.0.40
codegen_flags: <defaults>
</compile_context>

<pallas_src>
import numpy as np
import jax
import jax.numpy as jnp
from jax import lax
from jax.experimental import pallas as pl
from jax.experimental.pallas import tpu as pltpu

KSIZE = 3
NUM_FEATURES = 32
N_FINE = 100
N_COARSE = 20
NH_PAD = 128          # fused fine+coarse head lanes (100 + 20 -> 128, lane-dense)


def _round_up(n, m):
    return ((n + m - 1) // m) * m


def _choose_tiling(batch, max_tile=32):
    """Pick (B_pad, B_TILE): B_TILE a multiple of 8, capped to bound VMEM on
    v5e/v7x, and >=2 grid steps so a v7x megacore can use both TensorCores."""
    b_pad = max(16, _round_up(batch, 8))
    for bt in (32, 24, 16, 8):
        if bt <= max_tile and bt <= b_pad // 2 and b_pad % bt == 0:
            return b_pad, bt
    return b_pad, 8


def _make_kernel(inv_hw):
    def kernel(x_ref, wband_ref, whead_ref, bh_ref, out_ref):
        hp, bt, lanes = x_ref.shape           # (H+2, B_TILE, LANE_PAD)
        h_out = hp - 2                        # conv output rows per image
        wf_cols = wband_ref.shape[2]          # W * F (w-interleaved conv features)

        # Flatten (h, b) rows once; every later row window is sublane-aligned
        # because bt is a multiple of 8.
        xflat = x_ref[...].reshape(hp * bt, lanes)

        # 3x3 SAME conv == sum over the 3 kernel rows of one banded matmul each.
        # The banded weight absorbs the kw shift, the channel contraction and
        # (via the constant-1 input lane, kh==1 only) the conv bias.
        acc = None
        for kh in range(KSIZE):
            lhs = xflat[kh * bt:(kh + h_out) * bt, :]        # (H*B_TILE, LANE_PAD)
            part = jnp.dot(lhs, wband_ref[kh],
                           preferred_element_type=jnp.float32)
            acc = part if acc is None else acc + part
        y = jnp.maximum(acc, 0.0)                            # ReLU, (H*B_TILE, W*F) f32

        # Global average pool, fully in f32: sum over h via a leading-axis
        # reduction (VALU adds only), scale by 1/(H*W).  The sum over w is
        # folded into the head matmul below (whead is tiled W times).
        pooled = jnp.sum(y.reshape(h_out, bt, wf_cols), axis=0) * inv_hw

        # Heads: Dropout is identity at inference; fine+coarse Linear layers are
        # fused into one lane-dense matmul that also performs the w-fold.
        # TODO(synk): training-mode Dropout (stochastic masking) is not implemented; eval semantics only.
        out_ref[...] = (jnp.dot(pooled.astype(jnp.bfloat16), whead_ref[...],
                                preferred_element_type=jnp.float32)
                        + bh_ref[...])

    return kernel


def pack_params(params, height, width):
    """One-time packing of torch-layout params into the lane-dense, bias-folded
    matrices the kernel consumes (done once, outside the forward pass)."""
    wconv = np.asarray(params["wconv"], np.float32)        # (F, C, 3, 3) OIHW
    bconv = np.asarray(params["bconv"], np.float32)        # (F,)
    wf_ = np.asarray(params["wf"], np.float32)             # (F, 100)
    bf_ = np.asarray(params["bf"], np.float32)             # (100,)
    wc_ = np.asarray(params["wc"], np.float32)             # (F, 20)
    bc_ = np.asarray(params["bc"], np.float32)             # (20,)
    f, c = wconv.shape[0], wconv.shape[1]
    lane_in = (width + 2) * c                  # data lanes of the padded input row
    lane_pad = _round_up(lane_in + 1, 8)       # +1 constant-1 bias lane, pad to x8
    wf_cols = width * f                        # w-interleaved conv-output lanes

    # Banded conv weights: wband[kh][(w+kw)*C + ci, w*F + fo] = wconv[fo, ci, kh, kw].
    # Row `lane_in` of wband[1] carries the conv bias (pairs with the constant-1
    # input lane), so the kernel never does a separate bias add before the ReLU.
    wband = np.zeros((KSIZE, lane_pad, wf_cols), np.float32)
    for kh in range(KSIZE):
        for kw in range(KSIZE):
            blk = wconv[:, :, kh, kw].T        # (C, F)
            for w in range(width):
                r0 = (w + kw) * c
                wband[kh, r0:r0 + c, w * f:(w + 1) * f] = blk
    wband[1, lane_in, :] = np.tile(bconv, width)

    # Fused fine+coarse head, replicated W times so the head matmul also folds
    # the w-axis of the global average pool (pooled features stay w-interleaved).
    head = np.zeros((f, NH_PAD), np.float32)
    head[:, :N_FINE] = wf_
    head[:, N_FINE:N_FINE + N_COARSE] = wc_
    whead = np.tile(head, (width, 1))          # (W*F, 128)
    bh = np.zeros((1, NH_PAD), np.float32)
    bh[0, :N_FINE] = bf_
    bh[0, N_FINE:N_FINE + N_COARSE] = bc_

    return {
        "wband": jnp.asarray(wband, dtype=jnp.bfloat16),
        "whead": jnp.asarray(whead, dtype=jnp.bfloat16),
        "bh": jnp.asarray(bh, dtype=jnp.float32),
        "channels": c, "num_features": f,
        "lane_in": lane_in, "lane_pad": lane_pad,
        "height": height, "width": width,
    }


def unilateral_net(x_nchw, packed, max_tile=32):
    b, c, height, width = x_nchw.shape
    assert c == packed["channels"]
    assert height == packed["height"] and width == packed["width"]
    lane_in, lane_pad = packed["lane_in"], packed["lane_pad"]
    wf_cols = packed["whead"].shape[0]
    b_pad, b_tile = _choose_tiling(b, max_tile)

    # Input prep (tiny vs. a 9x im2col slab): NCHW -> (H+2, B_pad, (W+2)*C + bias
    # lane) bf16, with batch on the sublane axis so every in-kernel row window is
    # 8-aligned.  The im2col-equivalent work happens on the MXU inside the kernel.
    xh = jnp.transpose(x_nchw, (0, 2, 3, 1)).reshape(b, height, width * c)
    xh = jnp.pad(xh, ((0, 0), (1, 1), (c, c)))              # SAME spatial zero-pad
    xh = jnp.concatenate([xh, jnp.ones((b, height + 2, 1), xh.dtype)], axis=-1)
    xh = jnp.pad(xh, ((0, b_pad - b), (0, 0), (0, lane_pad - lane_in - 1)))
    xh = jnp.transpose(xh, (1, 0, 2)).astype(jnp.bfloat16)  # (H+2, B_pad, LANE_PAD)

    kernel = _make_kernel(1.0 / float(height * width))
    out = pl.pallas_call(
        kernel,
        out_shape=jax.ShapeDtypeStruct((b_pad, NH_PAD), jnp.float32),
        grid_spec=pltpu.PrefetchScalarGridSpec(
            num_scalar_prefetch=0,
            grid=(b_pad // b_tile,),
            in_specs=[
                pl.BlockSpec((height + 2, b_tile, lane_pad), lambda g: (0, g, 0)),
                pl.BlockSpec((KSIZE, lane_pad, wf_cols), lambda g: (0, 0, 0)),
                pl.BlockSpec((wf_cols, NH_PAD), lambda g: (0, 0)),
                pl.BlockSpec((1, NH_PAD), lambda g: (0, 0)),
            ],
            out_specs=pl.BlockSpec((b_tile, NH_PAD), lambda g: (g, 0)),
        ),
        compiler_params=pltpu.CompilerParams(
            dimension_semantics=("parallel",),
            vmem_limit_bytes=32 * 1024 * 1024,
        ),
    )(xh, packed["wband"], packed["whead"], packed["bh"])

    fh = out[:b, :N_FINE]
    ch = out[:b, N_FINE:N_FINE + N_COARSE]
    return fh, ch


def init_params(key, c, f=NUM_FEATURES):
    """Deterministic synthetic parameters (PyTorch-default-style uniform init)."""
    # TODO(synk): the configurable `arch` hemisphere / checkpoint loading is replaced by this fixed synthetic backbone.
    ks = jax.random.split(key, 6)
    fan_conv = c * KSIZE * KSIZE
    u = lambda k, shape, fan: jax.random.uniform(
        k, shape, jnp.float32, -1.0, 1.0) / jnp.sqrt(jnp.float32(fan))
    return {
        "wconv": u(ks[0], (f, c, KSIZE, KSIZE), fan_conv),   # torch OIHW layout
        "bconv": u(ks[1], (f,), fan_conv),
        "wf": u(ks[2], (f, N_FINE), f),
        "bf": u(ks[3], (N_FINE,), f),
        "wc": u(ks[4], (f, N_COARSE), f),
        "bc": u(ks[5], (N_COARSE,), f),
    }


def ref_forward(x_nchw, params):
    """Pure-JAX f32 reference mirroring the PyTorch forward (eval mode)."""
    f = params["wconv"].shape[0]
    y = lax.conv_general_dilated(
        x_nchw, params["wconv"], window_strides=(1, 1), padding="SAME",
        dimension_numbers=("NCHW", "OIHW", "NCHW"))
    y = jnp.maximum(y + params["bconv"].reshape(1, f, 1, 1), 0.0)
    feat = jnp.mean(y, axis=(2, 3))                          # global avg pool -> (B, F)
    fh = feat @ params["wf"] + params["bf"]
    ch = feat @ params["wc"] + params["bc"]
    return fh, ch


if __name__ == "__main__":
    B, C, H, W = 2, 4, 16, 16
    key = jax.random.PRNGKey(0)
    k_x, k_p = jax.random.split(key)
    x = jax.random.normal(k_x, (B, C, H, W), dtype=jnp.float32)
    params = init_params(k_p, C)
    packed = pack_params(params, H, W)

    fh, ch = unilateral_net(x, packed)
    jax.block_until_ready((fh, ch))

    fh_ref, ch_ref = ref_forward(x, params)
    assert fh.shape == (B, N_FINE) and ch.shape == (B, N_COARSE)
    # Conv/head operands are bf16 with f32 accumulation (pooling fully f32);
    # compare against the f32 reference with a bf16-rounding tolerance.
    assert jnp.allclose(fh, fh_ref, atol=2e-2, rtol=2e-2)
    assert jnp.allclose(ch, ch_ref, atol=2e-2, rtol=2e-2)
    print("KERNEL_OK")
</pallas_src>

<mosaic_0001>
module attributes {stable_mosaic.version = 11 : i64} {
  func.func @kernel(%arg0: i32, %arg1: memref<18x8x80xbf16, #tpu.memory_space<vmem>>, %arg2: memref<3x80x512xbf16, #tpu.memory_space<vmem>>, %arg3: memref<512x128xbf16, #tpu.memory_space<vmem>>, %arg4: memref<1x128xf32, #tpu.memory_space<vmem>>, %arg5: memref<8x128xf32, #tpu.memory_space<vmem>>) attributes {dimension_semantics = [#tpu.dimension_semantics<parallel>], iteration_bounds = array<i64: 2>, scalar_prefetch = 0 : i64, scratch_operands = 0 : i64, tpu.core_type = #tpu.core_type<tc>, window_params = [{transform_indices = @transform_0, window_bounds = array<i64: 18, 8, 80>}, {pipeline_mode = #tpu.pipeline_mode<synchronous>, transform_indices = @transform_1, window_bounds = array<i64: 3, 80, 512>}, {pipeline_mode = #tpu.pipeline_mode<synchronous>, transform_indices = @transform_2, window_bounds = array<i64: 512, 128>}, {pipeline_mode = #tpu.pipeline_mode<synchronous>, transform_indices = @transform_3, window_bounds = array<i64: 1, 128>}, {transform_indices = @transform_4, window_bounds = array<i64: 8, 128>}]} {
    %c0 = arith.constant 0 : index
    %c0_0 = arith.constant 0 : index
    %c0_1 = arith.constant 0 : index
    %0 = vector.load %arg1[%c0, %c0_0, %c0_1] : memref<18x8x80xbf16, #tpu.memory_space<vmem>>, vector<18x8x80xbf16>
    %1 = vector.shape_cast %0 : vector<18x8x80xbf16> to vector<144x80xbf16>
    %2 = vector.extract_strided_slice %1 {offsets = [0, 0], sizes = [128, 80], strides = [1, 1]} : vector<144x80xbf16> to vector<128x80xbf16>
    %c0_2 = arith.constant 0 : index
    %c0_3 = arith.constant 0 : index
    %c0_4 = arith.constant 0 : index
    %3 = vector.load %arg2[%c0_2, %c0_3, %c0_4] : memref<3x80x512xbf16, #tpu.memory_space<vmem>>, vector<1x80x512xbf16>
    %4 = vector.shape_cast %3 : vector<1x80x512xbf16> to vector<80x512xbf16>
    %cst = arith.constant dense<0.000000e+00> : vector<128x512xf32>
    %5 = tpu.matmul %2, %4, %cst {dimension_numbers = #tpu.dot_dimension_numbers<[1], [0], [0], [1], [0, 0, 1, 1], [], []>} : vector<128x80xbf16>, vector<80x512xbf16>, vector<128x512xf32> -> vector<128x512xf32>
    %6 = vector.extract_strided_slice %1 {offsets = [8, 0], sizes = [128, 80], strides = [1, 1]} : vector<144x80xbf16> to vector<128x80xbf16>
    %c1 = arith.constant 1 : index
    %c0_5 = arith.constant 0 : index
    %c0_6 = arith.constant 0 : index
    %7 = vector.load %arg2[%c1, %c0_5, %c0_6] : memref<3x80x512xbf16, #tpu.memory_space<vmem>>, vector<1x80x512xbf16>
    %8 = vector.shape_cast %7 : vector<1x80x512xbf16> to vector<80x512xbf16>
    %cst_7 = arith.constant dense<0.000000e+00> : vector<128x512xf32>
    %9 = tpu.matmul %6, %8, %cst_7 {dimension_numbers = #tpu.dot_dimension_numbers<[1], [0], [0], [1], [0, 0, 1, 1], [], []>} : vector<128x80xbf16>, vector<80x512xbf16>, vector<128x512xf32> -> vector<128x512xf32>
    %10 = arith.addf %5, %9 : vector<128x512xf32>
    %11 = vector.extract_strided_slice %1 {offsets = [16, 0], sizes = [128, 80], strides = [1, 1]} : vector<144x80xbf16> to vector<128x80xbf16>
    %c2 = arith.constant 2 : index
    %c0_8 = arith.constant 0 : index
    %c0_9 = arith.constant 0 : index
    %12 = vector.load %arg2[%c2, %c0_8, %c0_9] : memref<3x80x512xbf16, #tpu.memory_space<vmem>>, vector<1x80x512xbf16>
    %13 = vector.shape_cast %12 : vector<1x80x512xbf16> to vector<80x512xbf16>
    %cst_10 = arith.constant dense<0.000000e+00> : vector<128x512xf32>
    %14 = tpu.matmul %11, %13, %cst_10 {dimension_numbers = #tpu.dot_dimension_numbers<[1], [0], [0], [1], [0, 0, 1, 1], [], []>} : vector<128x80xbf16>, vector<80x512xbf16>, vector<128x512xf32> -> vector<128x512xf32>
    %15 = arith.addf %10, %14 : vector<128x512xf32>
    %cst_11 = arith.constant 0.000000e+00 : f32
    %16 = vector.broadcast %cst_11 : f32 to vector<128x512xf32>
    %17 = arith.maximumf %15, %16 : vector<128x512xf32>
    %18 = vector.shape_cast %17 : vector<128x512xf32> to vector<16x8x512xf32>
    %cst_12 = arith.constant dense<0.000000e+00> : vector<8x512xf32>
    %19 = vector.multi_reduction <add>, %18, %cst_12 [0] : vector<16x8x512xf32> to vector<8x512xf32>
    %cst_13 = arith.constant 3.906250e-03 : f32
    %20 = vector.broadcast %cst_13 : f32 to vector<8x512xf32>
    %21 = arith.mulf %19, %20 : vector<8x512xf32>
    %22 = arith.truncf %21 : vector<8x512xf32> to vector<8x512xbf16>
    %c0_14 = arith.constant 0 : index
    %c0_15 = arith.constant 0 : index
    %23 = vector.load %arg3[%c0_14, %c0_15] : memref<512x128xbf16, #tpu.memory_space<vmem>>, vector<512x128xbf16>
    %cst_16 = arith.constant dense<0.000000e+00> : vector<8x128xf32>
    %24 = tpu.matmul %22, %23, %cst_16 {dimension_numbers = #tpu.dot_dimension_numbers<[1], [0], [0], [1], [0, 0, 1, 1], [], []>} : vector<8x512xbf16>, vector<512x128xbf16>, vector<8x128xf32> -> vector<8x128xf32>
    %c0_17 = arith.constant 0 : index
    %c0_18 = arith.constant 0 : index
    %25 = vector.load %arg4[%c0_17, %c0_18] : memref<1x128xf32, #tpu.memory_space<vmem>>, vector<1x128xf32>
    %26 = vector.broadcast %25 : vector<1x128xf32> to vector<8x128xf32>
    %27 = arith.addf %24, %26 : vector<8x128xf32>
    %c0_19 = arith.constant 0 : index
    %c0_20 = arith.constant 0 : index
    %28 = vector.load %arg5[%c0_19, %c0_20] : memref<8x128xf32, #tpu.memory_space<vmem>>, vector<8x128xf32>
    tpu.vector_store %arg5[%c0_19, %c0_20], %27 {strides = array<i32>} : memref<8x128xf32, #tpu.memory_space<vmem>>, vector<8x128xf32>,
    return
  }
  func.func @transform_0(%arg0: i32) -> (i32, i32, i32) {
    %c0_i32 = arith.constant 0 : i32
    %c0_i32_0 = arith.constant 0 : i32
    %c0_i32_1 = arith.constant 0 : i32
    return %c0_i32, %arg0, %c0_i32_0 : i32, i32, i32
  }
  func.func @transform_1(%arg0: i32) -> (i32, i32, i32) {
    %c0_i32 = arith.constant 0 : i32
    %c0_i32_0 = arith.constant 0 : i32
    %c0_i32_1 = arith.constant 0 : i32
    %c0_i32_2 = arith.constant 0 : i32
    return %c0_i32, %c0_i32_0, %c0_i32_1 : i32, i32, i32
  }
  func.func @transform_2(%arg0: i32) -> (i32, i32) {
    %c0_i32 = arith.constant 0 : i32
    %c0_i32_0 = arith.constant 0 : i32
    %c0_i32_1 = arith.constant 0 : i32
    return %c0_i32, %c0_i32_0 : i32, i32
  }
  func.func @transform_3(%arg0: i32) -> (i32, i32) {
    %c0_i32 = arith.constant 0 : i32
    %c0_i32_0 = arith.constant 0 : i32
    %c0_i32_1 = arith.constant 0 : i32
    return %c0_i32, %c0_i32_0 : i32, i32
  }
  func.func @transform_4(%arg0: i32) -> (i32, i32) {
    %c0_i32 = arith.constant 0 : i32
    %c0_i32_0 = arith.constant 0 : i32
    return %arg0, %c0_i32 : i32, i32
  }
}

</mosaic_0001>

<bundles_post_ra>
// kernel: tpu_custom_call.1
= control target key start
LH: loop header
LB: loop body
LE: loop exit
PB: predicated region body
PF: predicated region fallthrough
CT: control target
= control target key end

     0   :  { %9 = vsyncpa [#allocation3], 0  ;;  %s3596_s0 = inlined_call_operand.hbm [shape: bf16[18,16,80], index: 0, kind: input, shape index: {}]   ;;  %s3597_s1 = inlined_call_operand.hbm [shape: bf16[3,80,512], index: 1, kind: input, shape index: {}]   ;;  %s3598_s2 = inlined_call_operand.hbm [shape: bf16[512,128], index: 2, kind: input, shape index: {}]   ;;  %s3599_s3 = inlined_call_operand.vmem [shape: f32[1,128], index: 3, kind: input, shape index: {}]   ;;  %s3600_s4 = inlined_call_operand.hbm [shape: f32[16,128], index: 4, kind: output, shape index: {}]  }
   0x1   :  { %11 = vsyncpa [#allocation3 + $0x1], 0 }
   0x2   :  { %12 = vsyncpa [#allocation6], 0 }
   0x3   :  { %13 = vsyncpa [#allocation4], 0 }
   0x4   :  { %15 = vsyncpa [#allocation4 + $0x1], 0  ;;  %s2877_s15 = smov 0   ;;  %s2879_s16 = smov 0  }
   0x5   :  { %s2881_s17 = smov 0   ;;  %s2883_s18 = smov 0  }
   0x6 LB: > { %s2898_s19 = sadd.s32 4294967295, %s2843_s18   ;;  %s1938_s20 = sadd.s32 4294967294, %s2843_s18   ;;  %s2843_s18 = sphi %s2883_s18, %s3770_s18   ;;  %s2839_s17 = sphi %s2881_s17, %s3769_s17   ;;  %s2835_s16 = sphi %s2879_s16, %s3768_s16   ;;  %s2831_s15 = sphi %s2877_s15, %s3767_s15  }
   0x7   : > { %p41_p0 = scmp.ne.s32.totalorder %s2835_s16, %s2831_s15  ;;  %p42_p1 = scmp.eq.s32.totalorder %s2898_s19, 0 }
   0x8   : > { %p128_p2 = scmp.eq.s32.totalorder %s2898_s19, 1  ;;  %p134_p3 = scmp.eq.s32.totalorder %s1938_s20, 1 }
   0x9   : > { %p2907_p4 = por %p42_p1, %p41_p0  ;;  %p1939_p5 = scmp.ge.s32.totalorder %s2843_s18, 1 }
   0xa   : > { %p2912_p6 = por %p134_p3, %p41_p0  ;;  %p141_p7 = scmp.lt.s32.totalorder %s2843_s18, 3 }
   0xb   : > { %s152_s25 = sshll.u32 %s3597_s1, 4  ;;  %s2845_s27 = smov [#allocation5]   ;;  %s153_s25 = int_to_ptr.hbm [resolvable:$true] %s152_s25 }
   0xc   : > { %p2920_p8 = pnand %p1939_p5, %p141_p7  ;;  %s154_s28 = sshll.u32 %s2845_s27, 4  ;;  %s155_s28 = int_to_ptr.vmem [resolvable:$true] %s154_s28 }
   0xd   : > { %s166_s5 = sshll.u32 %s3598_s2, 4  ;;  %s2846_s6 = smov 256   ;;  %s167_s5 = int_to_ptr.hbm [resolvable:$true] %s166_s5 }
   0xe   : > { %p2622_p9 = pneg %p2920_p8  ;;  %s2847_s7 = smov 16  }
   0xf   : > { %s2848_s8 = smov [#allocation7]   ;;  %s3601_s10 = smov 64  }
  0x10   : > { %p2623_p10 = pnand %p2622_p9, %p42_p1  ;;  %s168_s9 = sshll.u32 %s2848_s8, 4  ;;  %s169_s9 = int_to_ptr.vmem [resolvable:$true] %s168_s9 }
  0x11   : > { %s3602_s11 = smov 4   ;;  %s2936_s12 = sadd.s32 1, %s2843_s18  }
  0x12   : > { %2625 = dma.hbm_to_vmem [thread:$0]  (!%p2623_p10), %s153_s25, 7680, %s155_s28, [#allocation6], %s2846_s6, %s2846_s6, %s2847_s7  }
  0x13   : > { %2628 = dma.hbm_to_vmem [thread:$0]  (!%p2623_p10), %s167_s5, 4096, %s169_s9, [#allocation6], %s3601_s10, %s3601_s10, %s3602_s11  }
  0x14   : > { %s25_s13 = ssub.s32 %s2843_s18, %s2936_s12  ;;  %s28_s14 = sadd.s32 1, %s2839_s17 }
  0x15   : > { %p26_p12 = scmp.eq.s32.totalorder %s25_s13, 0  ;;  %p35_p13 = scmp.ne.s32.totalorder %s2839_s17, %s2835_s16 }
  0x16   : > { %p36_p0 = scmp.eq.s32.totalorder %s2843_s18, 0  ;;  %p2639_p7 = scmp.lt.s32.totalorder %s2843_s18, 2 }
  0x17   : > { %s2945_s20 = scalar_select %p26_p12, %s2839_s17, %s28_s14  }
  0x18   : > { %p37_p3 = por %p36_p0, %p35_p13  ;;  %p2949_p5 = por %p128_p2, %p35_p13 }
  0x19   : > { %s185_s24 = sand.u32 1, %s2839_s17   ;;  %s1943_s27 = sshll.u32 %s2843_s18, 2 }
  0x1a   : > { %s2608_s25 = smul.u32 72, %s185_s24  ;;  %p2956_p9 = pnand %p2639_p7, %p37_p3 }
  0x1b   : > { %s193_s5 = scalar_lea.hbm %s3596_s0, %s1943_s27  ;;  %s186_s9 = scalar_lea.sflag [#allocation3], %s185_s24 }
  0x1c   : > { %s194_s6 = sshll.u32 %s193_s5, 4  ;;  %s189_s7 = scalar_lea.vmem [#allocation2], %s2608_s25  ;;  %s195_s6 = int_to_ptr.hbm [resolvable:$true] %s194_s6 }
  0x1d   : > { %s196_s8 = sshll.u32 %s189_s7, 4  ;;  %s2743_s13 = sshra.s32 %s195_s6, 4  ;;  %s197_s8 = int_to_ptr.vmem [resolvable:$true] %s196_s8  ;;  %s2744_s13 = int_to_ptr.hbm [resolvable:$true] %s2743_s13 }
  0x1e   : > { %s2745_s14 = scalar_lea.hbm %s2744_s13, 72  ;;  %p2747_p10 = pneg %p2956_p9 }
  0x1f   : > { %p2746_p2 = scmp.ne.s32.totalorder %s2744_s13, %s2745_s14  ;;  %s2750_s29 = scalar_lea.hbm %s3596_s0, 144 }
  0x20   : > { %p2751_p0 = scmp.lt.s32.totalorder %s2744_s13, %s3596_s0  ;;  %p2752_p3 = scmp.lt.s32.totalorder %s2750_s29, %s2745_s14 }
  0x21   : > { %p2748_p12 = pnand %p2747_p10, %p2746_p2 }
  0x22   : > { %p2753_p7 = por %p2752_p3, %p2751_p0 }
  0x23   : > { %p2749_p13 = pneg %p2748_p12 }
  0x25   : > { %p2754_p11 = pnand %p2753_p7, %p2749_p13 }
  0x27   : > { %2757 = shalt.err (!%p2754_p11)
}
  0x28   : > { %s2851_s24 = smov 128   ;;  %s3608_s25 = smov 4  }
  0x29   : > { %s3609_s5 = smov 64   ;;  %208 = sbr.rel (%p2920_p8) target bundleno = 735 (0x2df), region = 36 }
  0x2a   : > { %2632 = dma.hbm_to_vmem [thread:$0]  (!%p2956_p9), %s195_s6, 1152, %s197_s8, %s186_s9, %s2851_s24, %s3609_s5, %s3608_s25  }
  0x2e   : > { %s2978_s10 = sand.u32 1, %s2835_s16  }
  0x2f   : > { %s2609_s11 = smul.u32 72, %s2978_s10  ;;  %s211_s7 = scalar_lea.sflag [#allocation3], %s2978_s10 }
  0x31   : > { %s2982_s13 = scalar_lea.vmem [#allocation2], %s2609_s11 }
  0x32   : > { %2818 = dma.done.wait (%p2907_p4), %s211_s7, 1152  }
  0x33   : > { %2820 = vsyncadd (%p2907_p4), %s211_s7, 4294966144 }
  0x34   : > { %2822 = dma.done.wait (%p42_p1), [#allocation6], 11776  }
  0x35   : > { %2824 = vsyncadd (%p42_p1), [#allocation6], 4294955520  ;;  %v2014_v0 = vld [vmem:[#allocation5 + $0x120] sm:$0xf]  ;;  %v2454_v1 = vld [vmem:[#allocation5 + $0x12c] sm:$0xf0] }
  0x36   : > { %v2452_v2 = vld [vmem:[#allocation5 + $0x124] sm:$0xf]  ;;  %v2015_v3 = vor.u32 %v2454_v1, %v2014_v0  ;;  %v2016_v4 = vld [vmem:[#allocation5 + $0x130] sm:$0xf0]  ;;  %v2022_v5 = vld [vmem:[#allocation5 + $0x128] sm:$0xf] }
  0x37   : > { %v2455_v6 = vld [vmem:[#allocation5 + $0x134] sm:$0xf0]  ;;  %v2019_v7 = vor.u32 %v2452_v2, %v2016_v4  ;;  %v2453_v9 = vld [vmem:[#allocation5 + $0x12c] sm:$0xf]  ;;  %v2024_v10 = vld [vmem:[#allocation5 + $0x138] sm:$0xf0] }
  0x38   : > { %v2023_v8 = vor.u32 %v2455_v6, %v2022_v5  ;;  %v1998_v11 = vld [vmem:[#allocation5 + $0x100] sm:$0xf]  ;;  %478 = vmatpush.bf16.msra.mxu0 %v2015_v3  ;;  %v2027_v12 = vor.u32 %v2453_v9, %v2024_v10  ;;  %v2450_v13 = vld [vmem:[#allocation5 + $0x10c] sm:$0xf0]  ;;  %v2448_v14 = vld [vmem:[#allocation5 + $0x104] sm:$0xf] }
  0x39   : > { %v2000_v15 = vld [vmem:[#allocation5 + $0x110] sm:$0xf0]  ;;  %527 = vmatpush.bf16.msra.mxu1 %v2019_v7  ;;  %v1999_v16 = vor.u32 %v2450_v13, %v1998_v11  ;;  %v2006_v18 = vld [vmem:[#allocation5 + $0x108] sm:$0xf]  ;;  %v2451_v19 = vld [vmem:[#allocation5 + $0x114] sm:$0xf0] }
  0x3a   : > { %576 = vmatpush.bf16.msra.mxu2 %v2023_v8  ;;  %v2003_v17 = vor.u32 %v2448_v14, %v2000_v15  ;;  %v2449_v20 = vld [vmem:[#allocation5 + $0x10c] sm:$0xf]  ;;  %625 = vmatpush.bf16.msra.mxu3 %v2027_v12  ;;  %v2007_v21 = vor.u32 %v2451_v19, %v2006_v18  ;;  %v2008_v22 = vld [vmem:[#allocation5 + $0x118] sm:$0xf0]  ;;  %v1982_v23 = vld [vmem:[#allocation5 + $0xe0] sm:$0xf] }
  0x3b   : > { %v2446_v24 = vld [vmem:[#allocation5 + $0xec] sm:$0xf0]  ;;  %v2011_v25 = vor.u32 %v2449_v20, %v2008_v22  ;;  %v2444_v26 = vld [vmem:[#allocation5 + $0xe4] sm:$0xf]  ;;  %v1984_v27 = vld [vmem:[#allocation5 + $0xf0] sm:$0xf0] }
  0x3c   : > { %v1990_v28 = vld [vmem:[#allocation5 + $0xe8] sm:$0xf]  ;;  %479 = vmatpush.bf16.msra.mxu0 %v1999_v16  ;;  %v1983_v29 = vor.u32 %v2446_v24, %v1982_v23  ;;  %v2447_v30 = vld [vmem:[#allocation5 + $0xf4] sm:$0xf0]  ;;  %v2445_v31 = vld [vmem:[#allocation5 + $0xec] sm:$0xf]  ;;  %v1987_v33 = vor.u32 %v2444_v26, %v1984_v27 }
  0x3d   : > { %v1992_v32 = vld [vmem:[#allocation5 + $0xf8] sm:$0xf0]  ;;  %528 = vmatpush.bf16.msra.mxu1 %v2003_v17  ;;  %v1991_v34 = vor.u32 %v2447_v30, %v1990_v28  ;;  %v1966_v35 = vld [vmem:[#allocation5 + $0xc0] sm:$0xf]  ;;  %v2442_v36 = vld [vmem:[#allocation5 + $0xcc] sm:$0xf0] }
  0x3e   : > { %577 = vmatpush.bf16.msra.mxu2 %v2007_v21  ;;  %v2440_v37 = vld [vmem:[#allocation5 + $0xc4] sm:$0xf]  ;;  %626 = vmatpush.bf16.msra.mxu3 %v2011_v25  ;;  %v1995_v38 = vor.u32 %v2445_v31, %v1992_v32  ;;  %v1968_v39 = vld [vmem:[#allocation5 + $0xd0] sm:$0xf0]  ;;  %v1974_v40 = vld [vmem:[#allocation5 + $0xc8] sm:$0xf]  ;;  %v1967_v44 = vor.u32 %v2442_v36, %v1966_v35 }
  0x3f   : > { %v2443_v41 = vld [vmem:[#allocation5 + $0xd4] sm:$0xf0]  ;;  %v2441_v42 = vld [vmem:[#allocation5 + $0xcc] sm:$0xf]  ;;  %v1976_v43 = vld [vmem:[#allocation5 + $0xd8] sm:$0xf0]  ;;  %v1971_v46 = vor.u32 %v2440_v37, %v1968_v39 }
  0x40   : > { %480 = vmatpush.bf16.msra.mxu0 %v1983_v29  ;;  %v1950_v45 = vld [vmem:[#allocation5 + $0xa0] sm:$0xf]  ;;  %v1975_v47 = vor.u32 %v2443_v41, %v1974_v40  ;;  %v2438_v48 = vld [vmem:[#allocation5 + $0xac] sm:$0xf0]  ;;  %v2436_v49 = vld [vmem:[#allocation5 + $0xa4] sm:$0xf]  ;;  %v1979_v51 = vor.u32 %v2441_v42, %v1976_v43 }
  0x41   : > { %529 = vmatpush.bf16.msra.mxu1 %v1987_v33  ;;  %v1952_v50 = vld [vmem:[#allocation5 + $0xb0] sm:$0xf0]  ;;  %v1958_v52 = vld [vmem:[#allocation5 + $0xa8] sm:$0xf]  ;;  %v2439_v53 = vld [vmem:[#allocation5 + $0xb4] sm:$0xf0]  ;;  %v1951_v58 = vor.u32 %v2438_v48, %v1950_v45 }
  0x42   : > { %578 = vmatpush.bf16.msra.mxu2 %v1991_v34  ;;  %627 = vmatpush.bf16.msra.mxu3 %v1995_v38  ;;  %v2437_v54 = vld [vmem:[#allocation5 + $0xac] sm:$0xf]  ;;  %v1960_v55 = vld [vmem:[#allocation5 + $0xb8] sm:$0xf0]  ;;  %v2134_v56 = vld [vmem:[#allocation5 + $0x88] sm:$0xf]  ;;  %v1955_v61 = vor.u32 %v2436_v49, %v1952_v50  ;;  %v1959_v62 = vor.u32 %v2439_v53, %v1958_v52 }
  0x43   : > { %v2435_v57 = vld [vmem:[#allocation5 + $0x94] sm:$0xf0]  ;;  %v2433_v59 = vld [vmem:[#allocation5 + $0x8c] sm:$0xf]  ;;  %v2136_v60 = vld [vmem:[#allocation5 + $0x98] sm:$0xf0]  ;;  %v1963_v1 = vor.u32 %v2437_v54, %v1960_v55 }
  0x44   : > { %481 = vmatpush.bf16.msra.mxu0 %v1967_v44  ;;  %v2594_v63 = vld [vmem:[%s2982_s13 + $0x4] sm:$0xff]   ;;  %v2135_v2 = vor.u32 %v2435_v57, %v2134_v56  ;;  %v2434_v3 = vld [vmem:[#allocation5 + $0x8c] sm:$0xf0]  ;;  %v2432_v4 = vld [vmem:[#allocation5 + $0x84] sm:$0xf]  ;;  %v2139_v6 = vor.u32 %v2433_v59, %v2136_v60  ;;  %vm450_vm0 = vcmask 654336  }
  0x45   : > { %530 = vmatpush.bf16.msra.mxu1 %v1971_v46  ;;  %v2126_v0 = vld [vmem:[#allocation5 + $0x80] sm:$0xf]  ;;  %v2128_v5 = vld [vmem:[#allocation5 + $0x90] sm:$0xf0]  ;;  %v2118_v7 = vld [vmem:[#allocation5 + $0x68] sm:$0xf] }
  0x46   : > { %579 = vmatpush.bf16.msra.mxu2 %v1975_v47  ;;  %628 = vmatpush.bf16.msra.mxu3 %v1979_v51  ;;  %v2431_v8 = vld [vmem:[#allocation5 + $0x74] sm:$0xf0]  ;;  %v2429_v9 = vld [vmem:[#allocation5 + $0x6c] sm:$0xf]  ;;  %v2120_v10 = vld [vmem:[#allocation5 + $0x78] sm:$0xf0]  ;;  %v2127_v11 = vor.u32 %v2434_v3, %v2126_v0  ;;  %v2131_v12 = vor.u32 %v2432_v4, %v2128_v5 }
  0x47   : > { %v2119_v13 = vor.u32 %v2431_v8, %v2118_v7  ;;  %v2123_v14 = vor.u32 %v2429_v9, %v2120_v10  ;;  %v2110_v15 = vld [vmem:[#allocation5 + $0x60] sm:$0xf]  ;;  %v2430_v16 = vld [vmem:[#allocation5 + $0x6c] sm:$0xf0]  ;;  %v2428_v17 = vld [vmem:[#allocation5 + $0x64] sm:$0xf] }
  0x48   : > { %482 = vmatpush.bf16.msra.mxu0 %v1951_v58  ;;  %v2111_v18 = vor.u32 %v2430_v16, %v2110_v15  ;;  %v2112_v19 = vld [vmem:[#allocation5 + $0x70] sm:$0xf0]  ;;  %v2596_v21 = vld [vmem:[%s2982_s13 + $0xc] sm:$0xff]   ;;  %v2427_v23 = vld [vmem:[#allocation5 + $0x54] sm:$0xf0]  ;;  %s1947_s28 = sshll.u32 %s2978_s10, 3 }
  0x49   : > { %531 = vmatpush.bf16.msra.mxu1 %v1955_v61  ;;  %v2115_v20 = vor.u32 %v2428_v17, %v2112_v19  ;;  %v2102_v22 = vld [vmem:[#allocation5 + $0x48] sm:$0xf]  ;;  %v2425_v24 = vld [vmem:[#allocation5 + $0x4c] sm:$0xf]  ;;  %v2104_v26 = vld [vmem:[#allocation5 + $0x58] sm:$0xf0] }
  0x4a   : > { %580 = vmatpush.bf16.msra.mxu2 %v1959_v62  ;;  %629 = vmatpush.bf16.msra.mxu3 %v1963_v1  ;;  %v2103_v25 = vor.u32 %v2427_v23, %v2102_v22  ;;  %v2094_v27 = vld [vmem:[#allocation5 + $0x40] sm:$0xf]  ;;  %v2426_v28 = vld [vmem:[#allocation5 + $0x4c] sm:$0xf0]  ;;  %v2107_v29 = vor.u32 %v2425_v24, %v2104_v26  ;;  %v2424_v32 = vld [vmem:[#allocation5 + $0x44] sm:$0xf] }
  0x4b   : > { %2028 = vmatmul.msk.bf16.vlgmr.msra.gmra.mxu0 %vm450_vm0, %v2594_v63  ;;  %v2095_v30 = vor.u32 %v2426_v28, %v2094_v27  ;;  %v2598_v31 = vld [vmem:[%s2982_s13 + $0x14] sm:$0xff]   ;;  %v2096_v33 = vld [vmem:[#allocation5 + $0x50] sm:$0xf0]  ;;  %v2423_v36 = vld [vmem:[#allocation5 + $0x34] sm:$0xf0]  ;;  %s2413_s6 = sshll.u32 %s2898_s19, 3 }
  0x4c   : > { %2036 = vmatmul.msk.bf16.vlgmr.msra.gmra.mxu1 %vm450_vm0, %v2594_v63  ;;  %808 = vmatpush.bf16.msrb.mxu0 %v2127_v11  ;;  %v2086_v34 = vld [vmem:[#allocation5 + $0x28] sm:$0xf]  ;;  %v2099_v35 = vor.u32 %v2424_v32, %v2096_v33  ;;  %v2421_v37 = vld [vmem:[#allocation5 + $0x2c] sm:$0xf]  ;;  %v2088_v38 = vld [vmem:[#allocation5 + $0x38] sm:$0xf0]  ;;  %s1844_s14 = scalar_lea.hbm %s3600_s4, %s2413_s6 }
  0x4d   : > { %2044 = vmatmul.msk.bf16.vlgmr.msra.gmra.mxu2 %vm450_vm0, %v2594_v63  ;;  %2052 = vmatmul.msk.bf16.vlgmr.msra.gmra.mxu3 %vm450_vm0, %v2594_v63  ;;  %v2087_v39 = vor.u32 %v2423_v36, %v2086_v34  ;;  %v2091_v40 = vor.u32 %v2421_v37, %v2088_v38  ;;  %v2600_v41 = vld [vmem:[%s2982_s13 + $0x1c] sm:$0xff]   ;;  %v2078_v42 = vld [vmem:[#allocation5 + $0x20] sm:$0xf]  ;;  %v2420_v44 = vld [vmem:[#allocation5 + $0x24] sm:$0xf]  ;;  %s249_s29 = scalar_lea.vmem [#allocation8], %s1947_s28 }
  0x4e   : > { %906 = vmatpush.bf16.msrb.mxu2 %v2135_v2  ;;  %955 = vmatpush.bf16.msrb.mxu3 %v2139_v6  ;;  %v2422_v43 = vld [vmem:[#allocation5 + $0x2c] sm:$0xf0]  ;;  %v2080_v46 = vld [vmem:[#allocation5 + $0x30] sm:$0xf0]  ;;  %v2070_v49 = vld [vmem:[#allocation5 + $0x8] sm:$0xf] }
  0x4f   : > { %857 = vmatpush.bf16.msrb.mxu1 %v2131_v12  ;;  %v2079_v45 = vor.u32 %v2422_v43, %v2078_v42  ;;  %v2083_v47 = vor.u32 %v2420_v44, %v2080_v46  ;;  %v2602_v48 = vld [vmem:[%s2982_s13 + $0x24] sm:$0xff]   ;;  %v2417_v51 = vld [vmem:[#allocation5 + $0xc] sm:$0xf]  ;;  %v2604_v55 = vld [vmem:[%s2982_s13 + $0x2c] sm:$0xff]   ;;  %s1846_s30 = sshll.u32 %s249_s29, 4  ;;  %s1848_s27 = sshll.u32 %s1844_s14, 4  ;;  %s1847_s30 = int_to_ptr.vmem [resolvable:$true] %s1846_s30  ;;  %s1849_s27 = int_to_ptr.hbm [resolvable:$true] %s1848_s27 }
  0x50   : > { %809 = vmatpush.bf16.msrb.mxu0 %v2111_v18  ;;  %v2419_v50 = vld [vmem:[#allocation5 + $0x14] sm:$0xf0]  ;;  %v2072_v53 = vld [vmem:[#allocation5 + $0x18] sm:$0xf0]  ;;  %v2062_v56 = vld [vmem:[#allocation5] sm:$0xf] }
  0x51   : > { %v2071_v52 = vor.u32 %v2419_v50, %v2070_v49  ;;  %v2075_v54 = vor.u32 %v2417_v51, %v2072_v53  ;;  %v2418_v57 = vld [vmem:[#allocation5 + $0xc] sm:$0xf0]  ;;  %v2416_v58 = vld [vmem:[#allocation5 + $0x4] sm:$0xf]  ;;  %v2064_v60 = vld [vmem:[#allocation5 + $0x10] sm:$0xf0] }
  0x52   : > { %907 = vmatpush.bf16.msrb.mxu2 %v2119_v13  ;;  %956 = vmatpush.bf16.msrb.mxu3 %v2123_v14  ;;  %v2063_v59 = vor.u32 %v2418_v57, %v2062_v56  ;;  %v2067_v61 = vor.u32 %v2416_v58, %v2064_v60  ;;  %v2606_v62 = vld [vmem:[%s2982_s13 + $0x34] sm:$0xff]   ;;  %v2475_v0 = vld [vmem:[#allocation5 + $0x1d4] sm:$0xf0]  ;;  %v2248_v3 = vld [vmem:[#allocation5 + $0x1d8] sm:$0xf0]  ;;  %s1834_s19 = scalar_lea.sflag [#allocation4], %s2978_s10 }
  0x53   : > { %858 = vmatpush.bf16.msrb.mxu1 %v2115_v20  ;;  %v2246_v63 = vld [vmem:[#allocation5 + $0x1c8] sm:$0xf]  ;;  %v2473_v1 = vld [vmem:[#allocation5 + $0x1cc] sm:$0xf]  ;;  %v2238_v5 = vld [vmem:[#allocation5 + $0x1c0] sm:$0xf] }
  0x54   : > { %810 = vmatpush.bf16.msrb.mxu0 %v2095_v30  ;;  %v2247_v2 = vor.u32 %v2475_v0, %v2246_v63  ;;  %v2251_v4 = vor.u32 %v2473_v1, %v2248_v3  ;;  %v2474_v6 = vld [vmem:[#allocation5 + $0x1cc] sm:$0xf0]  ;;  %v2472_v9 = vld [vmem:[#allocation5 + $0x1c4] sm:$0xf]  ;;  %v2240_v10 = vld [vmem:[#allocation5 + $0x1d0] sm:$0xf0] }
  0x55   : > { %v2239_v7 = vor.u32 %v2474_v6, %v2238_v5  ;;  %v2607_v8 = vld [vmem:[%s2982_s13 + $0x3c] sm:$0xff]   ;;  %v2243_v11 = vor.u32 %v2472_v9, %v2240_v10  ;;  %v2230_v12 = vld [vmem:[#allocation5 + $0x1a8] sm:$0xf]  ;;  %v2232_v16 = vld [vmem:[#allocation5 + $0x1b8] sm:$0xf0]  ;;  %s2787_s24 = sshra.s32 %s1849_s27, 4  ;;  %s2788_s24 = int_to_ptr.hbm [resolvable:$true] %s2787_s24 }
  0x56   : > { %908 = vmatpush.bf16.msrb.mxu2 %v2103_v25  ;;  %957 = vmatpush.bf16.msrb.mxu3 %v2107_v29  ;;  %v2471_v13 = vld [vmem:[#allocation5 + $0x1b4] sm:$0xf0]  ;;  %v2469_v14 = vld [vmem:[#allocation5 + $0x1ac] sm:$0xf]  ;;  %v2222_v24 = vld [vmem:[#allocation5 + $0x1a0] sm:$0xf]  ;;  %p2794_p11 = scmp.lt.s32.totalorder %s2788_s24, %s3600_s4 }
  0x57   : > { %859 = vmatpush.bf16.msrb.mxu1 %v2099_v35  ;;  %v2231_v15 = vor.u32 %v2471_v13, %v2230_v12  ;;  %v2235_v17 = vor.u32 %v2469_v14, %v2232_v16  ;;  %v2509_v19 = vld [vmem:[%s2982_s13] sm:$0xff]   ;;  %v2468_v28 = vld [vmem:[#allocation5 + $0x1a4] sm:$0xf]  ;;  %v2206_v51 = vld [vmem:[#allocation5 + $0x180] sm:$0xf]  ;;  %s2789_s25 = scalar_lea.hbm %s2788_s24, 8 }
  0x58   : > { %811 = vmatpush.bf16.msrb.mxu0 %v2079_v45  ;;  %v2470_v25 = vld [vmem:[#allocation5 + $0x1ac] sm:$0xf0]  ;;  %v2224_v29 = vld [vmem:[#allocation5 + $0x1b0] sm:$0xf0]  ;;  %v3056_v34 = vld [vmem:[%s2982_s13 + $0x8] sm:$0xff]   ;;  %p2790_p1 = scmp.ne.s32.totalorder %s2788_s24, %s2789_s25  ;;  %s2793_s7 = scalar_lea.hbm %s3600_s4, 16 }
  0x59   : > { %v2223_v27 = vor.u32 %v2470_v25, %v2222_v24  ;;  %v2227_v30 = vor.u32 %v2468_v28, %v2224_v29  ;;  %v2216_v44 = vld [vmem:[#allocation5 + $0x198] sm:$0xf0]  ;;  %v3083_v49 = vld [vmem:[%s2982_s13 + $0x10] sm:$0xff]   ;;  %v3110_v0 = vld [vmem:[%s2982_s13 + $0x18] sm:$0xff]   ;;  %p2795_p9 = scmp.lt.s32.totalorder %s2793_s7, %s2789_s25 }
  0x5a   : > { %909 = vmatpush.bf16.msrb.mxu2 %v2087_v39  ;;  %958 = vmatpush.bf16.msrb.mxu3 %v2091_v40  ;;  %v2214_v39 = vld [vmem:[#allocation5 + $0x188] sm:$0xf]  ;;  %v2467_v40 = vld [vmem:[#allocation5 + $0x194] sm:$0xf0]  ;;  %v2200_v6 = vld [vmem:[#allocation5 + $0x178] sm:$0xf0]  ;;  %p2791_p4 = pnand %p2790_p1, %p2949_p5 }
  0x5b   : > { %2029 = vmatmul.msk.bf16.gmra.mxu0 %vm450_vm0, %v2596_v21  ;;  %860 = vmatpush.bf16.msrb.mxu1 %v2083_v47  ;;  %v2215_v43 = vor.u32 %v2467_v40, %v2214_v39  ;;  %v2463_v3 = vld [vmem:[#allocation5 + $0x174] sm:$0xf0]  ;;  %v2190_v12 = vld [vmem:[#allocation5 + $0x160] sm:$0xf]  ;;  %v2462_v13 = vld [vmem:[#allocation5 + $0x16c] sm:$0xf0]  ;;  %p2796_p2 = por %p2795_p9, %p2794_p11 }
  0x5c   : > { %2037 = vmatmul.msk.bf16.gmra.mxu1 %vm450_vm0, %v2596_v21  ;;  %812 = vmatpush.bf16.msrb.mxu0 %v2063_v59  ;;  %v2460_v14 = vld [vmem:[#allocation5 + $0x164] sm:$0xf]  ;;  %v2192_v16 = vld [vmem:[#allocation5 + $0x170] sm:$0xf0]  ;;  %p2792_p8 = pneg %p2791_p4 }
  0x5d   : > { %2045 = vmatmul.msk.bf16.gmra.mxu2 %vm450_vm0, %v2596_v21  ;;  %2053 = vmatmul.msk.bf16.gmra.mxu3 %vm450_vm0, %v2596_v21 }
  0x5e   : > { %910 = vmatpush.bf16.msrb.mxu2 %v2071_v52  ;;  %959 = vmatpush.bf16.msrb.mxu3 %v2075_v54  ;;  %v2466_v52 = vld [vmem:[#allocation5 + $0x18c] sm:$0xf0]  ;;  %v2464_v54 = vld [vmem:[#allocation5 + $0x184] sm:$0xf]  ;;  %p2797_p10 = pnand %p2796_p2, %p2792_p8 }
  0x5f   : > { %861 = vmatpush.bf16.msrb.mxu1 %v2067_v61  ;;  %v2207_v53 = vor.u32 %v2466_v52, %v2206_v51  ;;  %v2184_v51 = vld [vmem:[#allocation5 + $0x158] sm:$0xf0] }
  0x60   : > { %1131 = vmatpush.bf16.msra.mxu0 %v2239_v7 }
  0x62   : > { %1229 = vmatpush.bf16.msra.mxu2 %v2247_v2  ;;  %1278 = vmatpush.bf16.msra.mxu3 %v2251_v4  ;;  %v2198_v2 = vld [vmem:[#allocation5 + $0x168] sm:$0xf]  ;;  %v2461_v4 = vld [vmem:[#allocation5 + $0x16c] sm:$0xf] }
  0x63   : > { %1180 = vmatpush.bf16.msra.mxu1 %v2243_v11  ;;  %v2199_v5 = vor.u32 %v2463_v3, %v2198_v2  ;;  %v2203_v7 = vor.u32 %v2461_v4, %v2200_v6  ;;  %v2174_v3 = vld [vmem:[#allocation5 + $0x140] sm:$0xf]  ;;  %v2458_v4 = vld [vmem:[#allocation5 + $0x14c] sm:$0xf0] }
  0x64   : > { %1132 = vmatpush.bf16.msra.mxu0 %v2223_v27  ;;  %v3137_v27 = vld [vmem:[%s2982_s13 + $0x20] sm:$0xff]  }
  0x66   : > { %1230 = vmatpush.bf16.msra.mxu2 %v2231_v15  ;;  %1279 = vmatpush.bf16.msra.mxu3 %v2235_v17  ;;  %v2191_v15 = vor.u32 %v2462_v13, %v2190_v12  ;;  %v2195_v17 = vor.u32 %v2460_v14, %v2192_v16  ;;  %v2456_v13 = vld [vmem:[#allocation5 + $0x144] sm:$0xf]  ;;  %v2176_v14 = vld [vmem:[#allocation5 + $0x150] sm:$0xf0] }
  0x67   : > { %1181 = vmatpush.bf16.msra.mxu1 %v2227_v30  ;;  %v2179_v16 = vor.u32 %v2456_v13, %v2176_v14 }
  0x68   : > { %1133 = vmatpush.bf16.msra.mxu0 %v2207_v53 }
  0x6a   : > { %1231 = vmatpush.bf16.msra.mxu2 %v2215_v43  ;;  %v2459_v43 = vld [vmem:[#allocation5 + $0x154] sm:$0xf0] }
  0x6b   : > { %2030 = vmatmul.msk.bf16.gmra.mxu0 %vm450_vm0, %v2598_v31 }
  0x6c   : > { %2038 = vmatmul.msk.bf16.gmra.mxu1 %vm450_vm0, %v2598_v31  ;;  %1134 = vmatpush.bf16.msra.mxu0 %v2191_v15 }
  0x6d   : > { %2046 = vmatmul.msk.bf16.gmra.mxu2 %vm450_vm0, %v2598_v31  ;;  %2054 = vmatmul.msk.bf16.gmra.mxu3 %vm450_vm0, %v2598_v31 }
  0x6e   : > { %1232 = vmatpush.bf16.msra.mxu2 %v2199_v5  ;;  %v2175_v5 = vor.u32 %v2458_v4, %v2174_v3 }
  0x70   : > { %1135 = vmatpush.bf16.msra.mxu0 %v2175_v5 }
  0x7b   : > { %2031 = vmatmul.msk.bf16.gmra.mxu0 %vm450_vm0, %v2600_v41 }
  0x7c   : > { %2039 = vmatmul.msk.bf16.gmra.mxu1 %vm450_vm0, %v2600_v41 }
  0x7d   : > { %2047 = vmatmul.msk.bf16.gmra.mxu2 %vm450_vm0, %v2600_v41  ;;  %2055 = vmatmul.msk.bf16.gmra.mxu3 %vm450_vm0, %v2600_v41  ;;  %v2465_v41 = vld [vmem:[#allocation5 + $0x18c] sm:$0xf] }
  0x7e   : > { %v2219_v45 = vor.u32 %v2465_v41, %v2216_v44  ;;  %v2182_v41 = vld [vmem:[#allocation5 + $0x148] sm:$0xf]  ;;  %v2457_v44 = vld [vmem:[#allocation5 + $0x14c] sm:$0xf] }
  0x7f   : > { %v2187_v52 = vor.u32 %v2457_v44, %v2184_v51  ;;  %v3191_v44 = vld [vmem:[%s2982_s13 + $0x30] sm:$0xff]  }
  0x80   : > { %1280 = vmatpush.bf16.msra.mxu3 %v2219_v45  ;;  %v2183_v45 = vor.u32 %v2459_v43, %v2182_v41 }
  0x82   : > { %1233 = vmatpush.bf16.msra.mxu2 %v2183_v45 }
  0x84   : > { %1281 = vmatpush.bf16.msra.mxu3 %v2203_v7 }
  0x88   : > { %1282 = vmatpush.bf16.msra.mxu3 %v2187_v52 }
  0x8b   : > { %2032 = vmatmul.msk.bf16.gmra.mxu0 %vm450_vm0, %v2602_v48 }
  0x8c   : > { %2040 = vmatmul.msk.bf16.gmra.mxu1 %vm450_vm0, %v2602_v48 }
  0x8d   : > { %2048 = vmatmul.msk.bf16.gmra.mxu2 %vm450_vm0, %v2602_v48  ;;  %2056 = vmatmul.msk.bf16.gmra.mxu3 %vm450_vm0, %v2602_v48 }
  0x9b   : > { %2033 = vmatmul.msk.bf16.gmra.mxu0 %vm450_vm0, %v2604_v55 }
  0x9c   : > { %2041 = vmatmul.msk.bf16.gmra.mxu1 %vm450_vm0, %v2604_v55 }
  0x9d   : > { %2049 = vmatmul.msk.bf16.gmra.mxu2 %vm450_vm0, %v2604_v55  ;;  %2057 = vmatmul.msk.bf16.gmra.mxu3 %vm450_vm0, %v2604_v55  ;;  %v2208_v55 = vld [vmem:[#allocation5 + $0x190] sm:$0xf0] }
  0x9e   : > { %v2211_v56 = vor.u32 %v2464_v54, %v2208_v55 }
  0xa0   : > { %1182 = vmatpush.bf16.msra.mxu1 %v2211_v56  ;;  %v3164_v56 = vld [vmem:[%s2982_s13 + $0x28] sm:$0xff]  }
  0xa4   : > { %1183 = vmatpush.bf16.msra.mxu1 %v2195_v17 }
  0xa8   : > { %1184 = vmatpush.bf16.msra.mxu1 %v2179_v16  ;;  %v3218_v16 = vld [vmem:[%s2982_s13 + $0x38] sm:$0xff]  }
  0xab   : > { %2034 = vmatmul.msk.bf16.gmra.mxu0 %vm450_vm0, %v2606_v62 }
  0xac   : > { %2042 = vmatmul.msk.bf16.gmra.mxu1 %vm450_vm0, %v2606_v62 }
  0xad   : > { %2050 = vmatmul.msk.bf16.gmra.mxu2 %vm450_vm0, %v2606_v62  ;;  %2058 = vmatmul.msk.bf16.gmra.mxu3 %vm450_vm0, %v2606_v62 }
  0xbb   : > { %2035 = vmatmul.msk.bf16.gmra.mxu0 %vm450_vm0, %v2607_v8 }
  0xbc   : > { %2043 = vmatmul.msk.bf16.gmra.mxu1 %vm450_vm0, %v2607_v8 }
  0xbd   : > { %2051 = vmatmul.msk.bf16.gmra.mxu2 %vm450_vm0, %v2607_v8  ;;  %2059 = vmatmul.msk.bf16.gmra.mxu3 %vm450_vm0, %v2607_v8 }
  0xc8   : > { %v3032_v18 = vpop.f32.mrf.mxu0 }
  0xc9   : > { %v3035_v20 = vpop.f32.mrf.mxu1 }
  0xcb   : > { %2140 = vmatmul.msk.bf16.vlgmr.msrb.gmra.mxu0 %vm450_vm0, %v2509_v19 }
  0xcc   : > { %2148 = vmatmul.msk.bf16.vlgmr.msrb.gmra.mxu1 %vm450_vm0, %v2509_v19 }
  0xcd   : > { %2156 = vmatmul.msk.bf16.vlgmr.msrb.gmra.mxu2 %vm450_vm0, %v2509_v19  ;;  %2164 = vmatmul.msk.bf16.vlgmr.msrb.gmra.mxu3 %vm450_vm0, %v2509_v19 }
  0xd0   : > { %v3041_v21 = vpop.f32.mrf.mxu2  ;;  %v3043_v22 = vpop.f32.mrf.mxu3 }
  0xd1   : > { %v3045_v23 = vpop.f32.mrf.mxu0  ;;  %v3047_v26 = vpop.f32.mrf.mxu1 }
  0xd8   : > { %v3049_v31 = vpop.f32.mrf.mxu2  ;;  %v3051_v32 = vpop.f32.mrf.mxu3 }
  0xd9   : > { %v3053_v33 = vpop.f32.mrf.mxu0  ;;  %v3058_v35 = vpop.f32.mrf.mxu1 }
  0xdb   : > { %2141 = vmatmul.msk.bf16.gmra.mxu0 %vm450_vm0, %v3056_v34 }
  0xdc   : > { %2149 = vmatmul.msk.bf16.gmra.mxu1 %vm450_vm0, %v3056_v34 }
  0xdd   : > { %2157 = vmatmul.msk.bf16.gmra.mxu2 %vm450_vm0, %v3056_v34  ;;  %2165 = vmatmul.msk.bf16.gmra.mxu3 %vm450_vm0, %v3056_v34 }
  0xe0   : > { %v3068_v36 = vpop.f32.mrf.mxu2  ;;  %v3070_v37 = vpop.f32.mrf.mxu3 }
  0xe1   : > { %v3072_v38 = vpop.f32.mrf.mxu0  ;;  %v3074_v42 = vpop.f32.mrf.mxu1 }
  0xe8   : > { %v3076_v46 = vpop.f32.mrf.mxu2  ;;  %v3078_v47 = vpop.f32.mrf.mxu3 }
  0xe9   : > { %v3080_v48 = vpop.f32.mrf.mxu0  ;;  %v3085_v50 = vpop.f32.mrf.mxu1 }
  0xeb   : > { %2142 = vmatmul.msk.bf16.gmra.mxu0 %vm450_vm0, %v3083_v49 }
  0xec   : > { %2150 = vmatmul.msk.bf16.gmra.mxu1 %vm450_vm0, %v3083_v49 }
  0xed   : > { %2158 = vmatmul.msk.bf16.gmra.mxu2 %vm450_vm0, %v3083_v49  ;;  %2166 = vmatmul.msk.bf16.gmra.mxu3 %vm450_vm0, %v3083_v49 }
  0xf0   : > { %v3095_v57 = vpop.f32.mrf.mxu2  ;;  %v3097_v58 = vpop.f32.mrf.mxu3 }
  0xf1   : > { %v3099_v59 = vpop.f32.mrf.mxu0  ;;  %v3101_v60 = vpop.f32.mrf.mxu1 }
  0xf8   : > { %v3103_v61 = vpop.f32.mrf.mxu2  ;;  %v3105_v62 = vpop.f32.mrf.mxu3 }
  0xf9   : > { %v3107_v63 = vpop.f32.mrf.mxu0  ;;  %v3112_v1 = vpop.f32.mrf.mxu1 }
  0xfa   : > { %3610 = vst [vmem:[#allocation12_spill] sm:$0xff] %v3112_v1  ;;  %v2481_v1 = vld [vmem:[#allocation7 + $0x28] sm:$0xff] }
  0xfb   : > { %2143 = vmatmul.msk.bf16.gmra.mxu0 %vm450_vm0, %v3110_v0 }
  0xfc   : > { %2151 = vmatmul.msk.bf16.gmra.mxu1 %vm450_vm0, %v3110_v0 }
  0xfd   : > { %2159 = vmatmul.msk.bf16.gmra.mxu2 %vm450_vm0, %v3110_v0  ;;  %2167 = vmatmul.msk.bf16.gmra.mxu3 %vm450_vm0, %v3110_v0 }
 0x100   : > { %v3122_v8 = vpop.f32.mrf.mxu2  ;;  %v3124_v9 = vpop.f32.mrf.mxu3 }
 0x101   : > { %3611 = vst [vmem:[#allocation13_spill] sm:$0xff] %v3122_v8  ;;  %v3126_v10 = vpop.f32.mrf.mxu0  ;;  %v3128_v11 = vpop.f32.mrf.mxu1 }
 0x102   : > { %3612 = vst [vmem:[#allocation14_spill] sm:$0xff] %v3124_v9 }
 0x103   : > { %3613 = vst [vmem:[#allocation15_spill] sm:$0xff] %v3126_v10 }
 0x104   : > { %3614 = vst [vmem:[#allocation16_spill] sm:$0xff] %v3128_v11 }
 0x108   : > { %v3130_v19 = vpop.f32.mrf.mxu2  ;;  %v3132_v24 = vpop.f32.mrf.mxu3 }
 0x109   : > { %3615 = vst [vmem:[#allocation17_spill] sm:$0xff] %v3130_v19  ;;  %v3134_v25 = vpop.f32.mrf.mxu0  ;;  %v3139_v28 = vpop.f32.mrf.mxu1 }
 0x10a   : > { %3616 = vst [vmem:[#allocation18_spill] sm:$0xff] %v3132_v24 }
 0x10b   : > { %3617 = vst [vmem:[#allocation19_spill] sm:$0xff] %v3134_v25  ;;  %2144 = vmatmul.msk.bf16.gmra.mxu0 %vm450_vm0, %v3137_v27 }
 0x10c   : > { %3618 = vst [vmem:[#allocation20_spill] sm:$0xff] %v3139_v28  ;;  %2152 = vmatmul.msk.bf16.gmra.mxu1 %vm450_vm0, %v3137_v27 }
 0x10d   : > { %2160 = vmatmul.msk.bf16.gmra.mxu2 %vm450_vm0, %v3137_v27  ;;  %2168 = vmatmul.msk.bf16.gmra.mxu3 %vm450_vm0, %v3137_v27 }
 0x110   : > { %v3149_v29 = vpop.f32.mrf.mxu2  ;;  %v3151_v30 = vpop.f32.mrf.mxu3 }
 0x111   : > { %3619 = vst [vmem:[#allocation21_spill] sm:$0xff] %v3149_v29  ;;  %v3153_v39 = vpop.f32.mrf.mxu0  ;;  %v3155_v40 = vpop.f32.mrf.mxu1 }
 0x112   : > { %3620 = vst [vmem:[#allocation22_spill] sm:$0xff] %v3151_v30 }
 0x113   : > { %3621 = vst [vmem:[#allocation23_spill] sm:$0xff] %v3153_v39 }
 0x114   : > { %3622 = vst [vmem:[#allocation24_spill] sm:$0xff] %v3155_v40 }
 0x118   : > { %v3157_v53 = vpop.f32.mrf.mxu2  ;;  %v3159_v54 = vpop.f32.mrf.mxu3 }
 0x119   : > { %3623 = vst [vmem:[#allocation25_spill] sm:$0xff] %v3157_v53  ;;  %v3161_v55 = vpop.f32.mrf.mxu0  ;;  %v3166_v2 = vpop.f32.mrf.mxu1 }
 0x11a   : > { %3624 = vst [vmem:[#allocation26_spill] sm:$0xff] %v3159_v54 }
 0x11b   : > { %3625 = vst [vmem:[#allocation27_spill] sm:$0xff] %v3161_v55  ;;  %2145 = vmatmul.msk.bf16.gmra.mxu0 %vm450_vm0, %v3164_v56 }
 0x11c   : > { %3626 = vst [vmem:[#allocation28_spill] sm:$0xff] %v3166_v2  ;;  %2153 = vmatmul.msk.bf16.gmra.mxu1 %vm450_vm0, %v3164_v56 }
 0x11d   : > { %2161 = vmatmul.msk.bf16.gmra.mxu2 %vm450_vm0, %v3164_v56  ;;  %2169 = vmatmul.msk.bf16.gmra.mxu3 %vm450_vm0, %v3164_v56 }
 0x120   : > { %v3176_v6 = vpop.f32.mrf.mxu2  ;;  %v3178_v7 = vpop.f32.mrf.mxu3 }
 0x121   : > { %3627 = vst [vmem:[#allocation29_spill] sm:$0xff] %v3176_v6  ;;  %v3180_v12 = vpop.f32.mrf.mxu0  ;;  %v3182_v15 = vpop.f32.mrf.mxu1 }
 0x122   : > { %3628 = vst [vmem:[#allocation30_spill] sm:$0xff] %v3178_v7 }
 0x123   : > { %3629 = vst [vmem:[#allocation31_spill] sm:$0xff] %v3180_v12 }
 0x124   : > { %3630 = vst [vmem:[#allocation32_spill] sm:$0xff] %v3182_v15 }
 0x128   : > { %v3184_v17 = vpop.f32.mrf.mxu2  ;;  %v3186_v41 = vpop.f32.mrf.mxu3 }
 0x129   : > { %3631 = vst [vmem:[#allocation33_spill] sm:$0xff] %v3184_v17  ;;  %v3188_v43 = vpop.f32.mrf.mxu0  ;;  %v3193_v45 = vpop.f32.mrf.mxu1 }
 0x12a   : > { %3632 = vst [vmem:[#allocation34_spill] sm:$0xff] %v3186_v41 }
 0x12b   : > { %3633 = vst [vmem:[#allocation35_spill] sm:$0xff] %v3188_v43  ;;  %2146 = vmatmul.msk.bf16.gmra.mxu0 %vm450_vm0, %v3191_v44 }
 0x12c   : > { %3634 = vst [vmem:[#allocation36_spill] sm:$0xff] %v3193_v45  ;;  %2154 = vmatmul.msk.bf16.gmra.mxu1 %vm450_vm0, %v3191_v44 }
 0x12d   : > { %2162 = vmatmul.msk.bf16.gmra.mxu2 %vm450_vm0, %v3191_v44  ;;  %2170 = vmatmul.msk.bf16.gmra.mxu3 %vm450_vm0, %v3191_v44 }
 0x130   : > { %v3203_v51 = vpop.f32.mrf.mxu2  ;;  %v3205_v52 = vpop.f32.mrf.mxu3 }
 0x131   : > { %3635 = vst [vmem:[#allocation37_spill] sm:$0xff] %v3203_v51  ;;  %v3207_v3 = vpop.f32.mrf.mxu0  ;;  %v3209_v4 = vpop.f32.mrf.mxu1 }
 0x132   : > { %3636 = vst [vmem:[#allocation38_spill] sm:$0xff] %v3205_v52 }
 0x133   : > { %3637 = vst [vmem:[#allocation39_spill] sm:$0xff] %v3207_v3 }
 0x134   : > { %3638 = vst [vmem:[#allocation40_spill] sm:$0xff] %v3209_v4 }
 0x138   : > { %v3211_v5 = vpop.f32.mrf.mxu2  ;;  %v3213_v13 = vpop.f32.mrf.mxu3 }
 0x139   : > { %3639 = vst [vmem:[#allocation41_spill] sm:$0xff] %v3211_v5  ;;  %v3215_v14 = vpop.f32.mrf.mxu0  ;;  %v3220_v45 = vpop.f32.mrf.mxu1 }
 0x13a   : > { %3640 = vst [vmem:[#allocation42_spill] sm:$0xff] %v3213_v13 }
 0x13b   : > { %3641 = vst [vmem:[#allocation43_spill] sm:$0xff] %v3215_v14  ;;  %2147 = vmatmul.msk.bf16.gmra.mxu0 %vm450_vm0, %v3218_v16 }
 0x13c   : > { %3642 = vst [vmem:[#allocation44_spill] sm:$0xff] %v3220_v45  ;;  %2155 = vmatmul.msk.bf16.gmra.mxu1 %vm450_vm0, %v3218_v16 }
 0x13d   : > { %2163 = vmatmul.msk.bf16.gmra.mxu2 %vm450_vm0, %v3218_v16  ;;  %2171 = vmatmul.msk.bf16.gmra.mxu3 %vm450_vm0, %v3218_v16 }
 0x140   : > { %v3230_v5 = vpop.f32.mrf.mxu2  ;;  %v3232_v13 = vpop.f32.mrf.mxu3 }
 0x141   : > { %3643 = vst [vmem:[#allocation45_spill] sm:$0xff] %v3230_v5  ;;  %v3234_v14 = vpop.f32.mrf.mxu0  ;;  %v3236_v4 = vpop.f32.mrf.mxu1 }
 0x142   : > { %3644 = vst [vmem:[#allocation46_spill] sm:$0xff] %v3232_v13 }
 0x143   : > { %3645 = vst [vmem:[#allocation47_spill] sm:$0xff] %v3234_v14 }
 0x144   : > { %3646 = vst [vmem:[#allocation48_spill] sm:$0xff] %v3236_v4 }
 0x148   : > { %v3238_v45 = vpop.f32.mrf.mxu2  ;;  %v3240_v3 = vpop.f32.mrf.mxu3 }
 0x149   : > { %3647 = vst [vmem:[#allocation49_spill] sm:$0xff] %v3238_v45  ;;  %v3242_v52 = vpop.f32.mrf.mxu0  ;;  %v3244_v51 = vpop.f32.mrf.mxu1 }
 0x14a   : > { %3648 = vst [vmem:[#allocation50_spill] sm:$0xff] %v3240_v3 }
 0x14b   : > { %2252 = vmatmul.msk.bf16.vlgmr.msra.gmra.mxu0 %vm450_vm0, %v3056_v34 }
 0x14c   : > { %2260 = vmatmul.msk.bf16.vlgmr.msra.gmra.mxu1 %vm450_vm0, %v3056_v34 }
 0x14d   : > { %2268 = vmatmul.msk.bf16.vlgmr.msra.gmra.mxu2 %vm450_vm0, %v3056_v34  ;;  %2276 = vmatmul.msk.bf16.vlgmr.msra.gmra.mxu3 %vm450_vm0, %v3056_v34 }
 0x150   : > { %v3254_v4 = vpop.f32.mrf.mxu2  ;;  %v3256_v45 = vpop.f32.mrf.mxu3 }
 0x151   : > { %v3258_v3 = vpop.f32.mrf.mxu0  ;;  %v3260_v14 = vpop.f32.mrf.mxu1 }
 0x158   : > { %v3262_v13 = vpop.f32.mrf.mxu2  ;;  %v3264_v5 = vpop.f32.mrf.mxu3 }
 0x159   : > { %v3266_v43 = vpop.f32.mrf.mxu0  ;;  %v3268_v41 = vpop.f32.mrf.mxu1 }
 0x15b   : > { %2253 = vmatmul.msk.bf16.gmra.mxu0 %vm450_vm0, %v3083_v49 }
 0x15c   : > { %2261 = vmatmul.msk.bf16.gmra.mxu1 %vm450_vm0, %v3083_v49 }
 0x15d   : > { %2269 = vmatmul.msk.bf16.gmra.mxu2 %vm450_vm0, %v3083_v49  ;;  %2277 = vmatmul.msk.bf16.gmra.mxu3 %vm450_vm0, %v3083_v49 }
 0x160   : > { %v3278_v34 = vpop.f32.mrf.mxu2  ;;  %v3280_v17 = vpop.f32.mrf.mxu3 }
 0x161   : > { %v3282_v15 = vpop.f32.mrf.mxu0  ;;  %v3284_v12 = vpop.f32.mrf.mxu1 }
 0x168   : > { %v3286_v7 = vpop.f32.mrf.mxu2  ;;  %v3288_v6 = vpop.f32.mrf.mxu3 }
 0x169   : > { %v3290_v54 = vpop.f32.mrf.mxu0  ;;  %v3292_v2 = vpop.f32.mrf.mxu1 }
 0x16b   : > { %2254 = vmatmul.msk.bf16.gmra.mxu0 %vm450_vm0, %v3110_v0 }
 0x16c   : > { %2262 = vmatmul.msk.bf16.gmra.mxu1 %vm450_vm0, %v3110_v0 }
 0x16d   : > { %2270 = vmatmul.msk.bf16.gmra.mxu2 %vm450_vm0, %v3110_v0  ;;  %2278 = vmatmul.msk.bf16.gmra.mxu3 %vm450_vm0, %v3110_v0 }
 0x170   : > { %v3302_v49 = vpop.f32.mrf.mxu2  ;;  %v3304_v53 = vpop.f32.mrf.mxu3 }
 0x171   : > { %v3306_v55 = vpop.f32.mrf.mxu0  ;;  %v3308_v40 = vpop.f32.mrf.mxu1 }
 0x178   : > { %v3310_v39 = vpop.f32.mrf.mxu2  ;;  %v3312_v30 = vpop.f32.mrf.mxu3 }
 0x179   : > { %v3314_v29 = vpop.f32.mrf.mxu0  ;;  %v3316_v28 = vpop.f32.mrf.mxu1 }
 0x17a   : > { %3649 = vst [vmem:[#allocation51_spill] sm:$0xff] %v3316_v28  ;;  %v913_v28 = vadd.f32 %v3254_v4, %v3041_v21 }
 0x17b   : > { %2255 = vmatmul.msk.bf16.gmra.mxu0 %vm450_vm0, %v3137_v27 }
 0x17c   : > { %2263 = vmatmul.msk.bf16.gmra.mxu1 %vm450_vm0, %v3137_v27 }
 0x17d   : > { %2271 = vmatmul.msk.bf16.gmra.mxu2 %vm450_vm0, %v3137_v27  ;;  %2279 = vmatmul.msk.bf16.gmra.mxu3 %vm450_vm0, %v3137_v27 }
 0x180   : > { %v3326_v0 = vpop.f32.mrf.mxu2  ;;  %v3328_v25 = vpop.f32.mrf.mxu3 }
 0x181   : > { %3650 = vst [vmem:[#allocation52_spill] sm:$0xff] %v3326_v0  ;;  %v3330_v24 = vpop.f32.mrf.mxu0  ;;  %v3332_v19 = vpop.f32.mrf.mxu1  ;;  %v2551_v0 = vld [vmem:[%s2982_s13 + $0x40] sm:$0xff]  }
 0x182   : > { %3651 = vst [vmem:[#allocation53_spill] sm:$0xff] %v3328_v25 }
 0x183   : > { %3652 = vst [vmem:[#allocation54_spill] sm:$0xff] %v3330_v24 }
 0x184   : > { %3653 = vst [vmem:[#allocation55_spill] sm:$0xff] %v3332_v19 }
 0x188   : > { %v3334_v11 = vpop.f32.mrf.mxu2  ;;  %v3336_v10 = vpop.f32.mrf.mxu3 }
 0x189   : > { %3654 = vst [vmem:[#allocation56_spill] sm:$0xff] %v3334_v11  ;;  %v3338_v9 = vpop.f32.mrf.mxu0  ;;  %v3340_v8 = vpop.f32.mrf.mxu1 }
 0x18a   : > { %3655 = vst [vmem:[#allocation57_spill] sm:$0xff] %v3336_v10 }
 0x18b   : > { %3656 = vst [vmem:[#allocation58_spill] sm:$0xff] %v3338_v9  ;;  %2256 = vmatmul.msk.bf16.gmra.mxu0 %vm450_vm0, %v3164_v56 }
 0x18c   : > { %3657 = vst [vmem:[#allocation59_spill] sm:$0xff] %v3340_v8  ;;  %2264 = vmatmul.msk.bf16.gmra.mxu1 %vm450_vm0, %v3164_v56 }
 0x18d   : > { %2272 = vmatmul.msk.bf16.gmra.mxu2 %vm450_vm0, %v3164_v56  ;;  %2280 = vmatmul.msk.bf16.gmra.mxu3 %vm450_vm0, %v3164_v56 }
 0x190   : > { %v3350_v27 = vpop.f32.mrf.mxu2  ;;  %v3352_v11 = vpop.f32.mrf.mxu3 }
 0x191   : > { %3658 = vst [vmem:[#allocation60_spill] sm:$0xff] %v3350_v27  ;;  %v3354_v10 = vpop.f32.mrf.mxu0  ;;  %v3356_v9 = vpop.f32.mrf.mxu1 }
 0x192   : > { %3659 = vst [vmem:[#allocation61_spill] sm:$0xff] %v3352_v11 }
 0x193   : > { %3660 = vst [vmem:[#allocation62_spill] sm:$0xff] %v3354_v10 }
 0x194   : > { %3661 = vst [vmem:[#allocation63_spill] sm:$0xff] %v3356_v9 }
 0x198   : > { %v3358_v8 = vpop.f32.mrf.mxu2  ;;  %v3360_v19 = vpop.f32.mrf.mxu3 }
 0x199   : > { %3662 = vst [vmem:[#allocation64_spill] sm:$0xff] %v3358_v8  ;;  %v3362_v24 = vpop.f32.mrf.mxu0  ;;  %v3364_v25 = vpop.f32.mrf.mxu1 }
 0x19a   : > { %3663 = vst [vmem:[#allocation65_spill] sm:$0xff] %v3360_v19 }
 0x19b   : > { %3664 = vst [vmem:[#allocation66_spill] sm:$0xff] %v3362_v24  ;;  %2257 = vmatmul.msk.bf16.gmra.mxu0 %vm450_vm0, %v3191_v44 }
 0x19c   : > { %3665 = vst [vmem:[#allocation67_spill] sm:$0xff] %v3364_v25  ;;  %2265 = vmatmul.msk.bf16.gmra.mxu1 %vm450_vm0, %v3191_v44 }
 0x19d   : > { %2273 = vmatmul.msk.bf16.gmra.mxu2 %vm450_vm0, %v3191_v44  ;;  %2281 = vmatmul.msk.bf16.gmra.mxu3 %vm450_vm0, %v3191_v44 }
 0x1a0   : > { %v3374_v56 = vpop.f32.mrf.mxu2  ;;  %v3376_v8 = vpop.f32.mrf.mxu3 }
 0x1a1   : > { %3666 = vst [vmem:[#allocation68_spill] sm:$0xff] %v3374_v56  ;;  %v3378_v19 = vpop.f32.mrf.mxu0  ;;  %v3380_v24 = vpop.f32.mrf.mxu1 }
 0x1a2   : > { %3667 = vst [vmem:[#allocation69_spill] sm:$0xff] %v3376_v8 }
 0x1a3   : > { %3668 = vst [vmem:[#allocation70_spill] sm:$0xff] %v3378_v19  ;;  %v2483_v19 = vld [vmem:[#allocation7 + $0x38] sm:$0xff] }
 0x1a4   : > { %3669 = vst [vmem:[#allocation71_spill] sm:$0xff] %v3380_v24  ;;  %v2507_v24 = vld [vmem:[#allocation7 + $0xf8] sm:$0xff]  ;;  %1780 = vmatpush.bf16.msrb.mxu0 %v2483_v19  ;;  %v2506_v19 = vld [vmem:[#allocation7 + $0xf0] sm:$0xff] }
 0x1a5   : > { %1819 = vmatpush.bf16.msrb.mxu3 %v2507_v24  ;;  %v2498_v24 = vld [vmem:[#allocation7 + $0xb0] sm:$0xff] }
 0x1a8   : > { %v3382_v25 = vpop.f32.mrf.mxu2  ;;  %v3384_v9 = vpop.f32.mrf.mxu3 }
 0x1a9   : > { %3670 = vst [vmem:[#allocation72_spill] sm:$0xff] %v3382_v25  ;;  %v3386_v10 = vpop.f32.mrf.mxu0  ;;  %v3388_v11 = vpop.f32.mrf.mxu1  ;;  %1820 = vmatpush.bf16.msrb.mxu3 %v2506_v19 }
 0x1aa   : > { %3671 = vst [vmem:[#allocation73_spill] sm:$0xff] %v3384_v9 }
 0x1ab   : > { %3672 = vst [vmem:[#allocation74_spill] sm:$0xff] %v3386_v10  ;;  %2258 = vmatmul.msk.bf16.gmra.mxu0 %vm450_vm0, %v3218_v16 }
 0x1ac   : > { %3673 = vst [vmem:[#allocation75_spill] sm:$0xff] %v3388_v11  ;;  %2266 = vmatmul.msk.bf16.gmra.mxu1 %vm450_vm0, %v3218_v16  ;;  %v2499_v11 = vld [vmem:[#allocation7 + $0xb8] sm:$0xff] }
 0x1ad   : > { %2274 = vmatmul.msk.bf16.gmra.mxu2 %vm450_vm0, %v3218_v16  ;;  %2282 = vmatmul.msk.bf16.gmra.mxu3 %vm450_vm0, %v3218_v16 }
 0x1ae   : > { %1806 = vmatpush.bf16.msrb.mxu2 %v2499_v11 }
 0x1b0   : > { %v3398_v44 = vpop.f32.mrf.mxu2  ;;  %v3400_v9 = vpop.f32.mrf.mxu3 }
 0x1b1   : > { %3674 = vst [vmem:[#allocation76_spill] sm:$0xff] %v3398_v44  ;;  %v3402_v10 = vpop.f32.mrf.mxu0  ;;  %v3404_v25 = vpop.f32.mrf.mxu1 }
 0x1b2   : > { %3675 = vst [vmem:[#allocation77_spill] sm:$0xff] %v3400_v9  ;;  %1807 = vmatpush.bf16.msrb.mxu2 %v2498_v24 }
 0x1b3   : > { %3676 = vst [vmem:[#allocation78_spill] sm:$0xff] %v3402_v10  ;;  %v815_v10 = vadd.f32 %v3242_v52, %v3032_v18  ;;  %v962_v18 = vadd.f32 %v3256_v45, %v3043_v22  ;;  %v817_v52 = vadd.f32 %v3258_v3, %v3045_v23  ;;  %v915_v23 = vadd.f32 %v3262_v13, %v3049_v31  ;;  %v2505_v3 = vld [vmem:[#allocation7 + $0xe8] sm:$0xff] }
 0x1b4   : > { %3677 = vst [vmem:[#allocation79_spill] sm:$0xff] %v3404_v25  ;;  %v2491_v25 = vld [vmem:[#allocation7 + $0x78] sm:$0xff]  ;;  %1821 = vmatpush.bf16.msrb.mxu3 %v2505_v3 }
 0x1b5   : > { %1793 = vmatpush.bf16.msrb.mxu1 %v2491_v25 }
 0x1b8   : > { %v3406_v8 = vpop.f32.mrf.mxu2  ;;  %v3408_v56 = vpop.f32.mrf.mxu3 }
 0x1b9   : > { %3678 = vst [vmem:[#allocation80_spill] sm:$0xff] %v3406_v8  ;;  %v3410_v27 = vpop.f32.mrf.mxu0  ;;  %v3413_v16 = vpop.f32.mrf.mxu1 }
 0x1ba   : > { %3679 = vst [vmem:[#allocation81_spill] sm:$0xff] %v3408_v56 }
 0x1bb   : > { %3680 = vst [vmem:[#allocation82_spill] sm:$0xff] %v3410_v27  ;;  %2259 = vmatmul.msk.bf16.gmra.mxu0 %vm450_vm0, %v2551_v0 }
 0x1bc   : > { %3681 = vst [vmem:[#allocation83_spill] sm:$0xff] %v3413_v16  ;;  %2267 = vmatmul.msk.bf16.gmra.mxu1 %vm450_vm0, %v2551_v0  ;;  %v2482_v16 = vld [vmem:[#allocation7 + $0x30] sm:$0xff] }
 0x1bd   : > { %2275 = vmatmul.msk.bf16.gmra.mxu2 %vm450_vm0, %v2551_v0  ;;  %2283 = vmatmul.msk.bf16.gmra.mxu3 %vm450_vm0, %v2551_v0  ;;  %v864_v0 = vadd.f32 %v3244_v51, %v3035_v20  ;;  %v866_v51 = vadd.f32 %v3260_v14, %v3047_v26  ;;  %v964_v26 = vadd.f32 %v3264_v5, %v3051_v32 }
 0x1be   : > { %1781 = vmatpush.bf16.msrb.mxu0 %v2482_v16 }
 0x1c0   : > { %v3419_v8 = vpop.f32.mrf.mxu2  ;;  %v3421_v56 = vpop.f32.mrf.mxu3 }
 0x1c1   : > { %3682 = vst [vmem:[#allocation84_spill] sm:$0xff] %v3419_v8  ;;  %v3423_v27 = vpop.f32.mrf.mxu0  ;;  %v3425_v11 = vpop.f32.mrf.mxu1  ;;  %v2490_v8 = vld [vmem:[#allocation7 + $0x70] sm:$0xff] }
 0x1c2   : > { %3683 = vst [vmem:[#allocation85_spill] sm:$0xff] %v3421_v56  ;;  %1794 = vmatpush.bf16.msrb.mxu1 %v2490_v8  ;;  %v2497_v8 = vld [vmem:[#allocation7 + $0xa8] sm:$0xff]  ;;  %1782 = vmatpush.bf16.msrb.mxu0 %v2481_v1  ;;  %v822_v1 = vadd.f32 %v3282_v15, %v3072_v38  ;;  %v920_v38 = vadd.f32 %v3286_v7, %v3076_v46 }
 0x1c3   : > { %3684 = vst [vmem:[#allocation86_spill] sm:$0xff] %v3423_v27  ;;  %1808 = vmatpush.bf16.msrb.mxu2 %v2497_v8 }
 0x1c4   : > { %3685 = vst [vmem:[#allocation87_spill] sm:$0xff] %v3425_v11 }
 0x1c8   : > { %v3429_v9 = vpop.f32.mrf.mxu2  ;;  %v3433_v44 = vpop.f32.mrf.mxu3 }
 0x1c9   : > { %3686 = vst [vmem:[#allocation88_spill] sm:$0xff] %v3429_v9  ;;  %v1137_v25 = vpop.f32.mrf.mxu0  ;;  %v1186_v27 = vpop.f32.mrf.mxu1 }
 0x1ca   : > { %3687 = vst [vmem:[#allocation89_spill] sm:$0xff] %v3433_v44  ;;  %v1324_v56 = vadd.f32 %v1137_v25, %v815_v10  ;;  %v1325_v11 = vadd.f32 %v1186_v27, %v864_v0 }
 0x1cc   : > { %v1388_v44 = vmax.f32 %v1324_v56, 0.0  ;;  %v1389_v4 = vmax.f32 %v1325_v11, 0.0  ;;  %v869_v56 = vadd.f32 %v3268_v41, %v3058_v35  ;;  %v2489_v35 = vld [vmem:[#allocation7 + $0x68] sm:$0xff]  ;;  %v918_v41 = vadd.f32 %v3278_v34, %v3068_v36 }
 0x1cd   : > { %1795 = vmatpush.bf16.msrb.mxu1 %v2489_v35  ;;  %v876_v35 = vadd.f32 %v3308_v40, %v3101_v60  ;;  %v2503_v60 = vld [vmem:[#allocation7 + $0xd8] sm:$0xff] }
 0x1ce   : > { %v2479_v40 = vld [vmem:[#allocation7 + $0x18] sm:$0xff] }
 0x1d0   : > { %v1235_v20 = vpop.f32.mrf.mxu2  ;;  %v1284_v10 = vpop.f32.mrf.mxu3 }
 0x1d1   : > { %v1326_v24 = vadd.f32 %v1235_v20, %v913_v28  ;;  %v1139_v19 = vpop.f32.mrf.mxu0  ;;  %v1327_v16 = vadd.f32 %v1284_v10, %v962_v18  ;;  %v1188_v0 = vpop.f32.mrf.mxu1  ;;  %v820_v28 = vadd.f32 %v3266_v43, %v3053_v33 }
 0x1d2   : > { %v1328_v27 = vadd.f32 %v1139_v19, %v817_v52  ;;  %v1329_v25 = vadd.f32 %v1188_v0, %v866_v51 }
 0x1d3   : > { %v1390_v52 = vmax.f32 %v1326_v24, 0.0  ;;  %v1391_v32 = vmax.f32 %v1327_v16, 0.0  ;;  %v871_v16 = vadd.f32 %v3284_v12, %v3074_v42  ;;  %v2504_v42 = vld [vmem:[#allocation7 + $0xe0] sm:$0xff] }
 0x1d4   : > { %v1392_v21 = vmax.f32 %v1328_v27, 0.0  ;;  %v1393_v9 = vmax.f32 %v1329_v25, 0.0  ;;  %v967_v25 = vadd.f32 %v3280_v17, %v3070_v37  ;;  %v2480_v12 = vld [vmem:[#allocation7 + $0x20] sm:$0xff]  ;;  %1822 = vmatpush.bf16.msrb.mxu3 %v2504_v42 }
 0x1d5   : > { %1783 = vmatpush.bf16.msrb.mxu0 %v2480_v12 }
 0x1d6   : > { %v1452_v22 = vadd.f32 %v1392_v21, %v1388_v44  ;;  %v1467_v45 = vadd.f32 %v1393_v9, %v1389_v4 }
 0x1d8   : > { %v1237_v14 = vpop.f32.mrf.mxu2  ;;  %v1286_v18 = vpop.f32.mrf.mxu3  ;;  %1823 = vmatpush.bf16.msrb.mxu3 %v2503_v60 }
 0x1d9   : > { %v1330_v11 = vadd.f32 %v1237_v14, %v915_v23  ;;  %v1142_v44 = vpop.f32.mrf.mxu0  ;;  %v1331_v31 = vadd.f32 %v1286_v18, %v964_v26  ;;  %v1191_v13 = vpop.f32.mrf.mxu1  ;;  %v825_v18 = vadd.f32 %v3290_v54, %v3080_v48  ;;  %1784 = vmatpush.bf16.msrb.mxu0 %v2479_v40  ;;  %v3704_v40 = vld [vmem:[#allocation20_spill] sm:$0xff] }
 0x1da   : > { %v1332_v9 = vadd.f32 %v1142_v44, %v820_v28  ;;  %v1333_v51 = vadd.f32 %v1191_v13, %v869_v56  ;;  %v2496_v56 = vld [vmem:[#allocation7 + $0xa0] sm:$0xff] }
 0x1db   : > { %v1394_v20 = vmax.f32 %v1330_v11, 0.0  ;;  %v1395_v5 = vmax.f32 %v1331_v31, 0.0  ;;  %v969_v11 = vadd.f32 %v3288_v6, %v3078_v47  ;;  %v874_v31 = vadd.f32 %v3292_v2, %v3085_v50  ;;  %1809 = vmatpush.bf16.msrb.mxu2 %v2496_v56 }
 0x1dc   : > { %v1396_v10 = vmax.f32 %v1332_v9, 0.0  ;;  %v1397_v43 = vmax.f32 %v1333_v51, 0.0  ;;  %v923_v50 = vadd.f32 %v3302_v49, %v3095_v57 }
 0x1dd   : > { %v1482_v33 = vadd.f32 %v1394_v20, %v1390_v52  ;;  %v1497_v19 = vadd.f32 %v1395_v5, %v1391_v32 }
 0x1de   : > { %v1453_v27 = vadd.f32 %v1452_v22, %v1396_v10  ;;  %v1468_v0 = vadd.f32 %v1467_v45, %v1397_v43  ;;  %v972_v43 = vadd.f32 %v3304_v53, %v3097_v58 }
 0x1e0   : > { %v1240_v24 = vpop.f32.mrf.mxu2  ;;  %v1289_v4 = vpop.f32.mrf.mxu3 }
 0x1e1   : > { %v1334_v21 = vadd.f32 %v1240_v24, %v918_v41  ;;  %v1144_v23 = vpop.f32.mrf.mxu0  ;;  %v1335_v22 = vadd.f32 %v1289_v4, %v967_v25  ;;  %v1193_v3 = vpop.f32.mrf.mxu1 }
 0x1e2   : > { %v1336_v8 = vadd.f32 %v1144_v23, %v822_v1  ;;  %v1337_v36 = vadd.f32 %v1193_v3, %v871_v16  ;;  %v974_v3 = vadd.f32 %v3312_v30, %v3105_v62 }
 0x1e3   : > { %v1398_v26 = vmax.f32 %v1334_v21, 0.0  ;;  %v1399_v34 = vmax.f32 %v1335_v22, 0.0 }
 0x1e4   : > { %v1400_v45 = vmax.f32 %v1336_v8, 0.0  ;;  %v1401_v37 = vmax.f32 %v1337_v36, 0.0  ;;  %v2495_v8 = vld [vmem:[#allocation7 + $0x98] sm:$0xff] }
 0x1e5   : > { %v1483_v28 = vadd.f32 %v1482_v33, %v1398_v26  ;;  %v1498_v17 = vadd.f32 %v1497_v19, %v1399_v34  ;;  %v2488_v33 = vld [vmem:[#allocation7 + $0x60] sm:$0xff]  ;;  %v827_v19 = vadd.f32 %v3306_v55, %v3099_v59  ;;  %v925_v59 = vadd.f32 %v3310_v39, %v3103_v61  ;;  %v3688_v34 = vld [vmem:[#allocation12_spill] sm:$0xff]  ;;  %1810 = vmatpush.bf16.msrb.mxu2 %v2495_v8 }
 0x1e6   : > { %v1454_v14 = vadd.f32 %v1453_v27, %v1400_v45  ;;  %v1469_v15 = vadd.f32 %v1468_v0, %v1401_v37  ;;  %1796 = vmatpush.bf16.msrb.mxu1 %v2488_v33  ;;  %v830_v26 = vadd.f32 %v3314_v29, %v3107_v63  ;;  %v3689_v45 = vld [vmem:[#allocation51_spill] sm:$0xff] }
 0x1e8   : > { %v1242_v44 = vpop.f32.mrf.mxu2  ;;  %v1291_v13 = vpop.f32.mrf.mxu3 }
 0x1e9   : > { %v1338_v9 = vadd.f32 %v1242_v44, %v920_v38  ;;  %v1147_v52 = vpop.f32.mrf.mxu0  ;;  %v1339_v46 = vadd.f32 %v1291_v13, %v969_v11  ;;  %v1196_v20 = vpop.f32.mrf.mxu1  ;;  %v2487_v11 = vld [vmem:[#allocation7 + $0x58] sm:$0xff]  ;;  %v3691_v44 = vld [vmem:[#allocation52_spill] sm:$0xff]  ;;  %v3692_v13 = vld [vmem:[#allocation14_spill] sm:$0xff] }
 0x1ea   : > { %v1340_v7 = vadd.f32 %v1147_v52, %v825_v18  ;;  %v1341_v32 = vadd.f32 %v1196_v20, %v874_v31  ;;  %v3690_v18 = vld [vmem:[#allocation13_spill] sm:$0xff]  ;;  %v3695_v20 = vld [vmem:[#allocation54_spill] sm:$0xff]  ;;  %1797 = vmatpush.bf16.msrb.mxu1 %v2487_v11 }
 0x1eb   : > { %v1402_v51 = vmax.f32 %v1338_v9, 0.0  ;;  %v1403_v5 = vmax.f32 %v1339_v46, 0.0  ;;  %v928_v31 = vadd.f32 %v3691_v44, %v3690_v18  ;;  %v3693_v52 = vld [vmem:[#allocation53_spill] sm:$0xff]  ;;  %v3708_v18 = vld [vmem:[#allocation22_spill] sm:$0xff] }
 0x1ec   : > { %v1404_v47 = vmax.f32 %v1340_v7, 0.0  ;;  %v1405_v10 = vmax.f32 %v1341_v32, 0.0  ;;  %v977_v46 = vadd.f32 %v3693_v52, %v3692_v13  ;;  %v3694_v7 = vld [vmem:[#allocation15_spill] sm:$0xff]  ;;  %v3709_v44 = vld [vmem:[#allocation61_spill] sm:$0xff] }
 0x1ed   : > { %v1484_v6 = vadd.f32 %v1483_v28, %v1402_v51  ;;  %v1499_v48 = vadd.f32 %v1498_v17, %v1403_v5  ;;  %v879_v28 = vadd.f32 %v3689_v45, %v3688_v34  ;;  %v832_v51 = vadd.f32 %v3695_v20, %v3694_v7  ;;  %v3696_v5 = vld [vmem:[#allocation16_spill] sm:$0xff]  ;;  %v3710_v7 = vld [vmem:[#allocation23_spill] sm:$0xff]  ;;  %v3711_v20 = vld [vmem:[#allocation62_spill] sm:$0xff] }
 0x1ee   : > { %v1455_v54 = vadd.f32 %v1454_v14, %v1404_v47  ;;  %v1470_v2 = vadd.f32 %v1469_v15, %v1405_v10  ;;  %v3697_v47 = vld [vmem:[#allocation55_spill] sm:$0xff] }
 0x1f0   : > { %v1245_v27 = vpop.f32.mrf.mxu2  ;;  %v1294_v0 = vpop.f32.mrf.mxu3 }
 0x1f1   : > { %v1342_v41 = vadd.f32 %v1245_v27, %v923_v50  ;;  %v1149_v25 = vpop.f32.mrf.mxu0  ;;  %v1343_v1 = vadd.f32 %v1294_v0, %v972_v43  ;;  %v1198_v16 = vpop.f32.mrf.mxu1 }
 0x1f2   : > { %v1344_v24 = vadd.f32 %v1149_v25, %v827_v19  ;;  %v1345_v57 = vadd.f32 %v1198_v16, %v876_v35  ;;  %v3699_v16 = vld [vmem:[#allocation56_spill] sm:$0xff] }
 0x1f3   : > { %v1406_v21 = vmax.f32 %v1342_v41, 0.0  ;;  %v1407_v49 = vmax.f32 %v1343_v1, 0.0 }
 0x1f4   : > { %v1408_v4 = vmax.f32 %v1344_v24, 0.0  ;;  %v1409_v58 = vmax.f32 %v1345_v57, 0.0  ;;  %v3698_v24 = vld [vmem:[#allocation17_spill] sm:$0xff] }
 0x1f5   : > { %v1485_v23 = vadd.f32 %v1484_v6, %v1406_v21  ;;  %v1500_v53 = vadd.f32 %v1499_v48, %v1407_v49  ;;  %v881_v6 = vadd.f32 %v3697_v47, %v3696_v5  ;;  %v930_v21 = vadd.f32 %v3699_v16, %v3698_v24  ;;  %v2494_v49 = vld [vmem:[#allocation7 + $0x90] sm:$0xff]  ;;  %v3716_v16 = vld [vmem:[#allocation25_spill] sm:$0xff] }
 0x1f6   : > { %v1456_v22 = vadd.f32 %v1455_v54, %v1408_v4  ;;  %v1471_v55 = vadd.f32 %v1470_v2, %v1409_v58  ;;  %v2502_v4 = vld [vmem:[#allocation7 + $0xd0] sm:$0xff]  ;;  %v3700_v58 = vld [vmem:[#allocation18_spill] sm:$0xff]  ;;  %1811 = vmatpush.bf16.msrb.mxu2 %v2494_v49 }
 0x1f7   : > { %1824 = vmatpush.bf16.msrb.mxu3 %v2502_v4  ;;  %v3712_v47 = vld [vmem:[#allocation24_spill] sm:$0xff]  ;;  %v3719_v4 = vld [vmem:[#allocation67_spill] sm:$0xff] }
 0x1f8   : > { %v1247_v36 = vpop.f32.mrf.mxu2  ;;  %v1296_v17 = vpop.f32.mrf.mxu3  ;;  %v3718_v49 = vld [vmem:[#allocation28_spill] sm:$0xff] }
 0x1f9   : > { %v1346_v37 = vadd.f32 %v1247_v36, %v925_v59  ;;  %v1152_v14 = vpop.f32.mrf.mxu0  ;;  %v1347_v61 = vadd.f32 %v1296_v17, %v974_v3  ;;  %v1201_v38 = vpop.f32.mrf.mxu1  ;;  %v3702_v59 = vld [vmem:[#allocation19_spill] sm:$0xff] }
 0x1fa   : > { %v1348_v39 = vadd.f32 %v1152_v14, %v830_v26  ;;  %v1349_v56 = vadd.f32 %v1201_v38, %v879_v28  ;;  %v3705_v3 = vld [vmem:[#allocation59_spill] sm:$0xff] }
 0x1fb   : > { %v1410_v15 = vmax.f32 %v1346_v37, 0.0  ;;  %v1411_v42 = vmax.f32 %v1347_v61, 0.0  ;;  %v884_v26 = vadd.f32 %v3705_v3, %v3704_v40 }
 0x1fc   : > { %v1412_v62 = vmax.f32 %v1348_v39, 0.0  ;;  %v1413_v12 = vmax.f32 %v1349_v56, 0.0 }
 0x1fd   : > { %v1486_v30 = vadd.f32 %v1485_v23, %v1410_v15  ;;  %v1501_v63 = vadd.f32 %v1500_v53, %v1411_v42  ;;  %v2478_v23 = vld [vmem:[#allocation7 + $0x10] sm:$0xff]  ;;  %v3701_v53 = vld [vmem:[#allocation57_spill] sm:$0xff] }
 0x1fe   : > { %v1457_v29 = vadd.f32 %v1456_v22, %v1412_v62  ;;  %v1472_v9 = vadd.f32 %v1471_v55, %v1413_v12  ;;  %v979_v22 = vadd.f32 %v3701_v53, %v3700_v58  ;;  %v3703_v55 = vld [vmem:[#allocation58_spill] sm:$0xff]  ;;  %1785 = vmatpush.bf16.msrb.mxu0 %v2478_v23  ;;  %v3706_v12 = vld [vmem:[#allocation21_spill] sm:$0xff]  ;;  %v889_v23 = vadd.f32 %v3719_v4, %v3718_v49  ;;  %v3736_v49 = vld [vmem:[#allocation36_spill] sm:$0xff] }
 0x1ff   : > { %v835_v8 = vadd.f32 %v3703_v55, %v3702_v59  ;;  %v3720_v59 = vld [vmem:[#allocation26_spill] sm:$0xff]  ;;  %v3721_v55 = vld [vmem:[#allocation65_spill] sm:$0xff]  ;;  %v3737_v4 = vld [vmem:[#allocation75_spill] sm:$0xff] }
 0x200   : > { %v1250_v32 = vpop.f32.mrf.mxu2  ;;  %v1299_v48 = vpop.f32.mrf.mxu3 }
 0x201   : > { %v1350_v10 = vadd.f32 %v1250_v32, %v928_v31  ;;  %v1154_v54 = vpop.f32.mrf.mxu0  ;;  %v1351_v33 = vadd.f32 %v1299_v48, %v977_v46  ;;  %v1203_v2 = vpop.f32.mrf.mxu1  ;;  %v982_v31 = vadd.f32 %v3709_v44, %v3708_v18 }
 0x202   : > { %v1352_v50 = vadd.f32 %v1154_v54, %v832_v51  ;;  %v1353_v19 = vadd.f32 %v1203_v2, %v881_v6  ;;  %v837_v51 = vadd.f32 %v3711_v20, %v3710_v7  ;;  %v3713_v6 = vld [vmem:[#allocation63_spill] sm:$0xff] }
 0x203   : > { %v1414_v43 = vmax.f32 %v1350_v10, 0.0  ;;  %v1415_v27 = vmax.f32 %v1351_v33, 0.0  ;;  %v886_v10 = vadd.f32 %v3713_v6, %v3712_v47 }
 0x204   : > { %v1416_v35 = vmax.f32 %v1352_v50, 0.0  ;;  %v1417_v0 = vmax.f32 %v1353_v19, 0.0  ;;  %v2493_v19 = vld [vmem:[#allocation7 + $0x88] sm:$0xff] }
 0x205   : > { %v1487_v41 = vadd.f32 %v1486_v30, %v1414_v43  ;;  %v1502_v25 = vadd.f32 %v1501_v63, %v1415_v27  ;;  %v2486_v30 = vld [vmem:[#allocation7 + $0x50] sm:$0xff]  ;;  %v2501_v27 = vld [vmem:[#allocation7 + $0xc8] sm:$0xff]  ;;  %1812 = vmatpush.bf16.msrb.mxu2 %v2493_v19 }
 0x206   : > { %v1458_v1 = vadd.f32 %v1457_v29, %v1416_v35  ;;  %v1473_v57 = vadd.f32 %v1472_v9, %v1417_v0  ;;  %v3707_v63 = vld [vmem:[#allocation60_spill] sm:$0xff]  ;;  %1798 = vmatpush.bf16.msrb.mxu1 %v2486_v30  ;;  %v2477_v35 = vld [vmem:[#allocation7 + $0x8] sm:$0xff]  ;;  %v3715_v0 = vld [vmem:[#allocation66_spill] sm:$0xff]  ;;  %1825 = vmatpush.bf16.msrb.mxu3 %v2501_v27 }
 0x207   : > { %v933_v29 = vadd.f32 %v3707_v63, %v3706_v12  ;;  %1786 = vmatpush.bf16.msrb.mxu0 %v2477_v35  ;;  %v3725_v30 = vld [vmem:[#allocation69_spill] sm:$0xff]  ;;  %v3726_v63 = vld [vmem:[#allocation31_spill] sm:$0xff]  ;;  %v3731_v35 = vld [vmem:[#allocation72_spill] sm:$0xff] }
 0x208   : > { %v1252_v60 = vpop.f32.mrf.mxu2  ;;  %v1301_v34 = vpop.f32.mrf.mxu3  ;;  %v3730_v27 = vld [vmem:[#allocation33_spill] sm:$0xff] }
 0x209   : > { %v1354_v36 = vadd.f32 %v1252_v60, %v930_v21  ;;  %v1157_v45 = vpop.f32.mrf.mxu0  ;;  %v1355_v28 = vadd.f32 %v1301_v34, %v979_v22  ;;  %v1206_v17 = vpop.f32.mrf.mxu1  ;;  %v3717_v21 = vld [vmem:[#allocation64_spill] sm:$0xff] }
 0x20a   : > { %v1356_v37 = vadd.f32 %v1157_v45, %v835_v8  ;;  %v1357_v61 = vadd.f32 %v1206_v17, %v884_v26  ;;  %v984_v8 = vadd.f32 %v3721_v55, %v3720_v59  ;;  %v2484_v59 = vld [vmem:[#allocation7 + $0x40] sm:$0xff] }
 0x20b   : > { %v1418_v14 = vmax.f32 %v1354_v36, 0.0  ;;  %v1419_v39 = vmax.f32 %v1355_v28, 0.0 }
 0x20c   : > { %v1420_v38 = vmax.f32 %v1356_v37, 0.0  ;;  %v1421_v56 = vmax.f32 %v1357_v61, 0.0  ;;  %v3722_v61 = vld [vmem:[#allocation29_spill] sm:$0xff] }
 0x20d   : > { %v1488_v15 = vadd.f32 %v1487_v41, %v1418_v14  ;;  %v1503_v42 = vadd.f32 %v1502_v25, %v1419_v39  ;;  %v3714_v41 = vld [vmem:[#allocation27_spill] sm:$0xff]  ;;  %v3723_v39 = vld [vmem:[#allocation68_spill] sm:$0xff] }
 0x20e   : > { %v1459_v62 = vadd.f32 %v1458_v1, %v1420_v38  ;;  %v1474_v11 = vadd.f32 %v1473_v57, %v1421_v56  ;;  %v840_v25 = vadd.f32 %v3715_v0, %v3714_v41  ;;  %v935_v57 = vadd.f32 %v3717_v21, %v3716_v16  ;;  %v2485_v14 = vld [vmem:[#allocation7 + $0x48] sm:$0xff]  ;;  %v3735_v21 = vld [vmem:[#allocation74_spill] sm:$0xff] }
 0x20f   : > { %v938_v38 = vadd.f32 %v3723_v39, %v3722_v61  ;;  %1799 = vmatpush.bf16.msrb.mxu1 %v2485_v14  ;;  %v940_v41 = vadd.f32 %v3731_v35, %v3730_v27  ;;  %v3734_v16 = vld [vmem:[#allocation35_spill] sm:$0xff]  ;;  %v3738_v61 = vld [vmem:[#allocation37_spill] sm:$0xff]  ;;  %v3739_v39 = vld [vmem:[#allocation76_spill] sm:$0xff] }
 0x210   : > { %v1255_v9 = vpop.f32.mrf.mxu2  ;;  %v1304_v52 = vpop.f32.mrf.mxu3  ;;  %v3748_v27 = vld [vmem:[#allocation42_spill] sm:$0xff]  ;;  %v3749_v35 = vld [vmem:[#allocation81_spill] sm:$0xff] }
 0x211   : > { %v1358_v13 = vadd.f32 %v1255_v9, %v933_v29  ;;  %v1159_v46 = vpop.f32.mrf.mxu0  ;;  %v1359_v32 = vadd.f32 %v1304_v52, %v982_v31  ;;  %v1208_v5 = vpop.f32.mrf.mxu1  ;;  %v3727_v29 = vld [vmem:[#allocation70_spill] sm:$0xff]  ;;  %v3729_v9 = vld [vmem:[#allocation71_spill] sm:$0xff] }
 0x212   : > { %v1360_v33 = vadd.f32 %v1159_v46, %v837_v51  ;;  %v1361_v2 = vadd.f32 %v1208_v5, %v886_v10  ;;  %v842_v18 = vadd.f32 %v3727_v29, %v3726_v63  ;;  %v3743_v63 = vld [vmem:[#allocation78_spill] sm:$0xff] }
 0x213   : > { %v1422_v48 = vmax.f32 %v1358_v13, 0.0  ;;  %v1423_v54 = vmax.f32 %v1359_v32, 0.0  ;;  %1800 = vmatpush.bf16.msrb.mxu1 %v2484_v59 }
 0x214   : > { %v1424_v1 = vmax.f32 %v1360_v33, 0.0  ;;  %v1425_v58 = vmax.f32 %v1361_v2, 0.0 }
 0x215   : > { %v1489_v50 = vadd.f32 %v1488_v15, %v1422_v48  ;;  %v1504_v43 = vadd.f32 %v1503_v42, %v1423_v54  ;;  %v3724_v42 = vld [vmem:[#allocation30_spill] sm:$0xff] }
 0x216   : > { %v1460_v36 = vadd.f32 %v1459_v62, %v1424_v1  ;;  %v1475_v28 = vadd.f32 %v1474_v11, %v1425_v58  ;;  %v987_v12 = vadd.f32 %v3725_v30, %v3724_v42  ;;  %v3728_v62 = vld [vmem:[#allocation32_spill] sm:$0xff]  ;;  %v3733_v1 = vld [vmem:[#allocation73_spill] sm:$0xff] }
 0x217   : > { %v891_v11 = vadd.f32 %v3729_v9, %v3728_v62  ;;  %v3741_v42 = vld [vmem:[#allocation77_spill] sm:$0xff] }
 0x218   : > { %v1257_v24 = vpop.f32.mrf.mxu2  ;;  %v1306_v53 = vpop.f32.mrf.mxu3 }
 0x219   : > { %v1162_v22 = vpop.f32.mrf.mxu0  ;;  %v1211_v40 = vpop.f32.mrf.mxu1  ;;  %v1362_v3 = vadd.f32 %v1257_v24, %v935_v57  ;;  %v1363_v34 = vadd.f32 %v1306_v53, %v984_v8  ;;  %v845_v57 = vadd.f32 %v3735_v21, %v3734_v16  ;;  %v3752_v16 = vld [vmem:[#allocation44_spill] sm:$0xff]  ;;  %v3753_v21 = vld [vmem:[#allocation83_spill] sm:$0xff] }
 0x21a   : > { %v1364_v60 = vadd.f32 %v1162_v22, %v840_v25  ;;  %v1365_v26 = vadd.f32 %v1211_v40, %v889_v23  ;;  %v3732_v25 = vld [vmem:[#allocation34_spill] sm:$0xff] }
 0x21b   : > { %v1426_v15 = vmax.f32 %v1362_v3, 0.0  ;;  %v1427_v44 = vmax.f32 %v1363_v34, 0.0  ;;  %v989_v24 = vadd.f32 %v3733_v1, %v3732_v25  ;;  %v2476_v22 = vld [vmem:[#allocation7] sm:$0xff] }
 0x21c   : > { %v1428_v45 = vmax.f32 %v1364_v60, 0.0  ;;  %v1429_v37 = vmax.f32 %v1365_v26, 0.0  ;;  %v2492_v26 = vld [vmem:[#allocation7 + $0x80] sm:$0xff]  ;;  %1787 = vmatpush.bf16.msrb.mxu0 %v2476_v22 }
 0x21d   : > { %v1490_v32 = vadd.f32 %v1489_v50, %v1426_v15  ;;  %v1505_v6 = vadd.f32 %v1504_v43, %v1427_v44  ;;  %v894_v43 = vadd.f32 %v3737_v4, %v3736_v49  ;;  %1813 = vmatpush.bf16.msrb.mxu2 %v2492_v26  ;;  %v3744_v44 = vld [vmem:[#allocation40_spill] sm:$0xff]  ;;  %v3751_v25 = vld [vmem:[#allocation82_spill] sm:$0xff]  ;;  %v3754_v26 = vld [vmem:[#allocation45_spill] sm:$0xff] }
 0x21e   : > { %v1461_v17 = vadd.f32 %v1460_v36, %v1428_v45  ;;  %v1476_v56 = vadd.f32 %v1475_v28, %v1429_v37  ;;  %v2500_v36 = vld [vmem:[#allocation7 + $0xc0] sm:$0xff] }
 0x21f   : > { %1826 = vmatpush.bf16.msrb.mxu3 %v2500_v36  ;;  %v3755_v36 = vld [vmem:[#allocation84_spill] sm:$0xff] }
 0x220   : > { %v1260_v31 = vpop.f32.mrf.mxu2  ;;  %v1309_v52 = vpop.f32.mrf.mxu3 }
 0x221   : > { %v1366_v13 = vadd.f32 %v1260_v31, %v938_v38  ;;  %v1164_v46 = vpop.f32.mrf.mxu0  ;;  %v1367_v7 = vadd.f32 %v1309_v52, %v987_v12  ;;  %v1213_v51 = vpop.f32.mrf.mxu1  ;;  %v943_v38 = vadd.f32 %v3739_v39, %v3738_v61  ;;  %v3742_v12 = vld [vmem:[#allocation39_spill] sm:$0xff]  ;;  %v3759_v61 = vld [vmem:[#allocation86_spill] sm:$0xff] }
 0x222   : > { %v1368_v20 = vadd.f32 %v1164_v46, %v842_v18  ;;  %v1369_v47 = vadd.f32 %v1213_v51, %v891_v11  ;;  %v847_v29 = vadd.f32 %v3743_v63, %v3742_v12  ;;  %v3745_v31 = vld [vmem:[#allocation79_spill] sm:$0xff] }
 0x223   : > { %v1430_v5 = vmax.f32 %v1366_v13, 0.0  ;;  %v1431_v10 = vmax.f32 %v1367_v7, 0.0  ;;  %v896_v62 = vadd.f32 %v3745_v31, %v3744_v44 }
 0x224   : > { %v1432_v48 = vmax.f32 %v1368_v20, 0.0  ;;  %v1433_v33 = vmax.f32 %v1369_v47, 0.0 }
 0x225   : > { %v1491_v54 = vadd.f32 %v1490_v32, %v1430_v5  ;;  %v1506_v2 = vadd.f32 %v1505_v6, %v1431_v10 }
 0x226   : > { %v1462_v19 = vadd.f32 %v1461_v17, %v1432_v48  ;;  %v1477_v0 = vadd.f32 %v1476_v56, %v1433_v33  ;;  %v3740_v56 = vld [vmem:[#allocation38_spill] sm:$0xff]  ;;  %v3747_v33 = vld [vmem:[#allocation80_spill] sm:$0xff] }
 0x227   : > { %v992_v30 = vadd.f32 %v3741_v42, %v3740_v56  ;;  %v3761_v56 = vld [vmem:[#allocation87_spill] sm:$0xff] }
 0x228   : > { %v1262_v50 = vpop.f32.mrf.mxu2  ;;  %v1311_v58 = vpop.f32.mrf.mxu3 }
 0x229   : > { %v1370_v23 = vadd.f32 %v1262_v50, %v940_v41  ;;  %v1167_v53 = vpop.f32.mrf.mxu0  ;;  %v1371_v55 = vadd.f32 %v1311_v58, %v989_v24  ;;  %v1216_v60 = vpop.f32.mrf.mxu1  ;;  %v994_v41 = vadd.f32 %v3749_v35, %v3748_v27 }
 0x22a   : > { %v1372_v8 = vadd.f32 %v1167_v53, %v845_v57  ;;  %v1373_v3 = vadd.f32 %v1216_v60, %v894_v43  ;;  %v899_v57 = vadd.f32 %v3753_v21, %v3752_v16 }
 0x22b   : > { %v1434_v40 = vmax.f32 %v1370_v23, 0.0  ;;  %v1435_v34 = vmax.f32 %v1371_v55, 0.0 }
 0x22c   : > { %v1436_v45 = vmax.f32 %v1372_v8, 0.0  ;;  %v1437_v37 = vmax.f32 %v1373_v3, 0.0 }
 0x22d   : > { %v1492_v28 = vadd.f32 %v1491_v54, %v1434_v40  ;;  %v1507_v17 = vadd.f32 %v1506_v2, %v1435_v34  ;;  %v3746_v54 = vld [vmem:[#allocation41_spill] sm:$0xff]  ;;  %v948_v34 = vadd.f32 %v3755_v36, %v3754_v26 }
 0x22e   : > { %v1463_v14 = vadd.f32 %v1462_v19, %v1436_v45  ;;  %v1478_v15 = vadd.f32 %v1477_v0, %v1437_v37  ;;  %v945_v2 = vadd.f32 %v3747_v33, %v3746_v54  ;;  %v3750_v0 = vld [vmem:[#allocation43_spill] sm:$0xff]  ;;  %v3757_v37 = vld [vmem:[#allocation85_spill] sm:$0xff] }
 0x22f   : > { %v850_v1 = vadd.f32 %v3751_v25, %v3750_v0 }
 0x230   : > { %v1265_v18 = vpop.f32.mrf.mxu2  ;;  %v1314_v11 = vpop.f32.mrf.mxu3 }
 0x231   : > { %v1374_v9 = vadd.f32 %v1265_v18, %v943_v38  ;;  %v1169_v13 = vpop.f32.mrf.mxu0  ;;  %v1375_v52 = vadd.f32 %v1314_v11, %v992_v30  ;;  %v1218_v7 = vpop.f32.mrf.mxu1 }
 0x232   : > { %v1376_v46 = vadd.f32 %v1169_v13, %v847_v29  ;;  %v1377_v51 = vadd.f32 %v1218_v7, %v896_v62 }
 0x233   : > { %v1438_v20 = vmax.f32 %v1374_v9, 0.0  ;;  %v1439_v32 = vmax.f32 %v1375_v52, 0.0 }
 0x234   : > { %v1440_v5 = vmax.f32 %v1376_v46, 0.0  ;;  %v1441_v6 = vmax.f32 %v1377_v51, 0.0  ;;  %v3763_v51 = vld [vmem:[#allocation88_spill] sm:$0xff] }
 0x235   : > { %v1493_v47 = vadd.f32 %v1492_v28, %v1438_v20  ;;  %v1508_v10 = vadd.f32 %v1507_v17, %v1439_v32  ;;  %v3756_v28 = vld [vmem:[#allocation46_spill] sm:$0xff]  ;;  %v3762_v20 = vld [vmem:[#allocation49_spill] sm:$0xff] }
 0x236   : > { %v1464_v48 = vadd.f32 %v1463_v14, %v1440_v5  ;;  %v1479_v19 = vadd.f32 %v1478_v15, %v1441_v6  ;;  %v997_v17 = vadd.f32 %v3757_v37, %v3756_v28  ;;  %v3758_v14 = vld [vmem:[#allocation47_spill] sm:$0xff]  ;;  %v3760_v15 = vld [vmem:[#allocation48_spill] sm:$0xff]  ;;  %v950_v32 = vadd.f32 %v3763_v51, %v3762_v20  ;;  %v3765_v6 = vld [vmem:[#allocation89_spill] sm:$0xff] }
 0x237   : > { %v852_v39 = vadd.f32 %v3759_v61, %v3758_v14  ;;  %v901_v42 = vadd.f32 %v3761_v56, %v3760_v15 }
 0x238   : > { %v1267_v24 = vpop.f32.mrf.mxu2  ;;  %v1316_v49 = vpop.f32.mrf.mxu3 }
 0x239   : > { %v1378_v50 = vadd.f32 %v1267_v24, %v945_v2  ;;  %v1172_v4 = vpop.f32.mrf.mxu0  ;;  %v1379_v43 = vadd.f32 %v1316_v49, %v994_v41  ;;  %v1221_v58 = vpop.f32.mrf.mxu1 }
 0x23a   : > { %v1380_v23 = vadd.f32 %v1172_v4, %v850_v1  ;;  %v1381_v22 = vadd.f32 %v1221_v58, %v899_v57 }
 0x23b   : > { %v1442_v53 = vmax.f32 %v1378_v50, 0.0  ;;  %v1443_v59 = vmax.f32 %v1379_v43, 0.0  ;;  %v2682_v43 = vld [vmem:[%s3599_s3] ss:$0 sm:$0xff] }
 0x23c   : > { %v1444_v55 = vmax.f32 %v1380_v23, 0.0  ;;  %v1445_v60 = vmax.f32 %v1381_v22, 0.0 }
 0x23d   : > { %v1494_v8 = vadd.f32 %v1493_v47, %v1442_v53  ;;  %v1509_v40 = vadd.f32 %v1508_v10, %v1443_v59  ;;  %v3764_v47 = vld [vmem:[#allocation50_spill] sm:$0xff] }
 0x23e   : > { %v1465_v3 = vadd.f32 %v1464_v48, %v1444_v55  ;;  %v1480_v45 = vadd.f32 %v1479_v19, %v1445_v60  ;;  %v999_v10 = vadd.f32 %v3765_v6, %v3764_v47 }
 0x240   : > { %v1270_v38 = vpop.f32.mrf.mxu2  ;;  %v1319_v12 = vpop.f32.mrf.mxu3 }
 0x241   : > { %v1382_v30 = vadd.f32 %v1270_v38, %v948_v34  ;;  %v1174_v63 = vpop.f32.mrf.mxu0  ;;  %v1383_v29 = vadd.f32 %v1319_v12, %v997_v17  ;;  %v1223_v44 = vpop.f32.mrf.mxu1 }
 0x242   : > { %v1384_v18 = vadd.f32 %v1174_v63, %v852_v39  ;;  %v1385_v62 = vadd.f32 %v1223_v44, %v901_v42 }
 0x243   : > { %v1446_v31 = vmax.f32 %v1382_v30, 0.0  ;;  %v1447_v9 = vmax.f32 %v1383_v29, 0.0 }
 0x244   : > { %v1448_v11 = vmax.f32 %v1384_v18, 0.0  ;;  %v1449_v52 = vmax.f32 %v1385_v62, 0.0 }
 0x245   : > { %v1495_v13 = vadd.f32 %v1494_v8, %v1446_v31  ;;  %v1510_v46 = vadd.f32 %v1509_v40, %v1447_v9 }
 0x246   : > { %v1466_v7 = vadd.f32 %v1465_v3, %v1448_v11  ;;  %v1481_v5 = vadd.f32 %v1480_v45, %v1449_v52 }
 0x248   : > { %v1512_v48 = vmul.f32 0.00390625, %v1466_v7  ;;  %v1272_v54 = vpop.f32.mrf.mxu2  ;;  %v1513_v33 = vmul.f32 0.00390625, %v1481_v5  ;;  %v1321_v19 = vpop.f32.mrf.mxu3 }
 0x249   : > { %v1386_v2 = vadd.f32 %v1272_v54, %v950_v32  ;;  %v1387_v35 = vadd.f32 %v1321_v19, %v999_v10 }
 0x24a   : > { %v1516_v27 = vpack.c.bf16 %v1512_v48, %v1512_v48  ;;  %v1517_v41 = vpack.c.bf16 %v1513_v33, %v1513_v33 }
 0x24b   : > { %v1450_v0 = vmax.f32 %v1386_v2, 0.0  ;;  %v1451_v25 = vmax.f32 %v1387_v35, 0.0 }
 0x24c   : > { %1788 = vmatmul.bf16.vlgmr.msrb.gmra.mxu0 %v1516_v27  ;;  %1801 = vmatmul.bf16.vlgmr.msrb.gmra.mxu1 %v1517_v41 }
 0x24d   : > { %v1496_v1 = vadd.f32 %v1495_v13, %v1450_v0  ;;  %v1511_v24 = vadd.f32 %v1510_v46, %v1451_v25 }
 0x24f   : > { %v1514_v16 = vmul.f32 0.00390625, %v1496_v1  ;;  %v1515_v21 = vmul.f32 0.00390625, %v1511_v24 }
 0x251   : > { %v1518_v57 = vpack.c.bf16 %v1514_v16, %v1514_v16  ;;  %v1519_v50 = vpack.c.bf16 %v1515_v21, %v1515_v21 }
 0x253   : > { %1814 = vmatmul.bf16.vlgmr.msrb.gmra.mxu2 %v1518_v57  ;;  %1827 = vmatmul.bf16.vlgmr.msrb.gmra.mxu3 %v1519_v50 }
 0x2c9   : > { %v1789_v49 = vpop.f32.mrf.mxu0  ;;  %v1802_v4 = vpop.f32.mrf.mxu1 }
 0x2ca   : > { %v1790_v23 = vadd.f32 %v2682_v43, %v1789_v49 }
 0x2cc   : > { %v1803_v22 = vadd.f32 %v1802_v4, %v1790_v23 }
 0x2d1   : > { %v1791_v58 = vpop.f32.mrf.mxu0  ;;  %v1804_v53 = vpop.f32.mrf.mxu1 }
 0x2d6   : > { %v1815_v59 = vpop.f32.mrf.mxu2  ;;  %v1828_v8 = vpop.f32.mrf.mxu3 }
 0x2d7   : > { %v1816_v55 = vadd.f32 %v1815_v59, %v1803_v22 }
 0x2d9   : > { %v1829_v60 = vadd.f32 %v1828_v8, %v1816_v55 }
 0x2db   : > { %1832 = vst [vmem:[%s249_s29] sm:$0xff] %v1829_v60 }
 0x2dc   : > { %2800 = shalt.err (!%p2797_p10)
}
 0x2dd   : > { %2620 = dma.vmem_to_hbm [thread:$0]  (%p2949_p5), %s1847_s30, 128, %s1849_s27, %s1834_s19  }
 0x2de   : > { %v1817_v40 = vpop.f32.mrf.mxu2  ;;  %v1830_v3 = vpop.f32.mrf.mxu3 }
 0x2df PF: > { %s1860_s10 = sand.u32 1, %s2831_s15   ;;  %p3766_p12 = scmp.ge.s32.totalorder %s2843_s18, 2 }
 0x2e0   : > { %s1861_s26 = scalar_lea.sflag [#allocation4], %s1860_s10 }
 0x2e1   : > { %p2634_p13 = pnand %p3766_p12, %p2912_p6 }
 0x2e3   : > { %p2635_p0 = pneg %p2634_p13 }
 0x2e5   : > { %2826 = dma.done.wait (%p2635_p0), %s1861_s26, 128  }
 0x2e6   : > { %2828 = vsyncadd (%p2635_p0), %s1861_s26, 4294967168  ;;  %p18_p5 = scmp.ge.s32.totalorder %s2936_s12, 4   ;;  %s3767_s15 = smov %s2835_s16 }
 0x2e7   : > { %s3768_s16 = smov %s2839_s17  ;;  %s3769_s17 = smov %s2945_s20 }
 0x2e8   : > { %s3770_s18 = smov %s2936_s12  ;;  %20 = sbr.rel (!%p18_p5) target bundleno = 6 (0x6), region = 91 }
 0x2ed   :  { %1867 = vsyncpa [#allocation3], 1 }
 0x2ee   :  { %1869 = vsyncpa [#allocation3 + $0x1], 1 }
 0x2ef   :  { %1870 = vsyncpa [#allocation6], 1 }
 0x2f0   :  { %1871 = vsyncpa [#allocation4], 1 }
 0x2f1   :  { %1873 = vsyncpa [#allocation4 + $0x1], 1 }

</bundles_post_ra>
